<compile_context>
chip_gen: v7x
topology: tpu7x:2x2x1
jax: 0.10.0
libtpu: 0.0.40
codegen_flags: <defaults>
</compile_context>

<pallas_src>
import functools

import jax
import jax.numpy as jnp
import numpy as np
from jax.experimental import pallas as pl
from jax.experimental.pallas import tpu as pltpu

UM = 2              # um_dim
NEG_SLOPE = 0.01    # F.leaky_relu default
EPS = 1e-6
HIDDEN_DIMS = (32, 64, 128, 256, 512)
DEFAULT_TM = 256    # row-tile target (multiple of 8, ideally 256)


# ----------------------------- Pallas kernel ------------------------------- #

def _mag_conv_kernel(*refs, activation, o_half, has_residual):
    if has_residual:
        a_ref, w_ref, b_ref, r_ref, o_ref = refs
    else:
        a_ref, w_ref, b_ref, o_ref = refs

    a0 = a_ref[0]                                   # (TM, Kh) bf16, group 0
    a1 = a_ref[1]                                   # (TM, Kh) bf16, group 1

    # Per-pixel range (max - min over g1, i, j) per um-group.  Reductions are
    # done in f32 (portable to v5e which lacks bf16 VPU ops); the matmul
    # operands stay bf16 for native MXU rate.
    a0f = a0.astype(jnp.float32)
    a1f = a1.astype(jnp.float32)
    s0 = (jnp.max(a0f, axis=1, keepdims=True)
          - jnp.min(a0f, axis=1, keepdims=True)) + EPS        # (TM, 1)
    s1 = (jnp.max(a1f, axis=1, keepdims=True)
          - jnp.min(a1f, axis=1, keepdims=True)) + EPS
    r0 = pl.reciprocal(s0, approx=False)   # EUP; approx=True if tolerance allows
    r1 = pl.reciprocal(s1, approx=False)

    # dot(A/s, W) == dot(A, W) / s  (s is per-row), so fold the normalization
    # to the output side: bf16 x bf16 -> f32 accumulate on the MXU.
    p0 = jnp.dot(a0, w_ref[0], preferred_element_type=jnp.float32)   # (TM, O)
    p1 = jnp.dot(a1, w_ref[1], preferred_element_type=jnp.float32)
    y = p0 * r0 + p1 * r1 + b_ref[...]

    if activation:
        y = jnp.where(y >= 0, y, NEG_SLOPE * y)               # leaky_relu

    # inverse_transform: output channels are parity-major (all even original
    # channels first, then odd), so the rescale is a two-slab select -- no tile.
    lane = jax.lax.broadcasted_iota(jnp.int32, y.shape, 1)
    y = y * jnp.where(lane < o_half, s0, s1)

    if has_residual:
        y = y + r_ref[...]                                    # fused residual
    o_ref[...] = y


# ------------------------------ JAX glue ------------------------------------ #

def _to_group_major(x):
    """(B, C, H, W) torch order -> (B, H, W, C) with parity-major channels."""
    xg = jnp.concatenate([x[:, 0::2], x[:, 1::2]], axis=1)
    return jnp.transpose(xg, (0, 2, 3, 1))


def _from_group_major(xg):
    """(B, H, W, O) parity-major -> (B, O, H, W) original channel order."""
    B, H, W, O = xg.shape
    oh = O // 2
    x = jnp.stack([xg[..., :oh], xg[..., oh:]], axis=-1).reshape(B, H, W, O)
    return jnp.transpose(x, (0, 3, 1, 2))


def _build_patches(xg, k):
    """im2col per um-group from the parity-major NHWC activation.

    A[g2, b*H*W + h*W + w, (i*k+j)*Ch + g1] = pad(x)[b, h+i, w+j, g2*Ch+g1]
    (replicate padding, pad = (k-1)//2).  Returned in bf16.
    """
    B, H, W, C = xg.shape
    ch = C // UM
    pad = (k - 1) // 2
    xp = jnp.pad(xg, ((0, 0), (pad, pad), (pad, pad), (0, 0)), mode="edge")
    groups = []
    for g2 in range(UM):
        xpg = xp[..., g2 * ch:(g2 + 1) * ch]                  # (B, Hp, Wp, Ch)
        cols = [xpg[:, i:i + H, j:j + W, :]
                for i in range(k) for j in range(k)]          # each (B,H,W,Ch)
        g = jnp.concatenate(cols, axis=-1)                    # (B,H,W,k*k*Ch)
        groups.append(g.reshape(B * H * W, k * k * ch))
    return jnp.stack(groups, axis=0).astype(jnp.bfloat16)     # (2, BM, Kh)


def convert_conv_params(W, b):
    """Torch-layout (O, C, k, k) weight -> per-group, parity-major matmul form.

    Wg[g2, (i*k+j)*Ch + g1, o'] = W[o_old, g1*2+g2, j, i]   (note (i, j) swap
    from the transpose(2,4).transpose(-1,-2) re-packing in conv2d.transform),
    with output channels parity-major: o' = (o_old % 2)*O/2 + o_old//2.
    """
    O, C, k, _ = W.shape
    assert C % UM == 0 and O % UM == 0
    ch = C // UM
    Wp = jnp.concatenate([W[0::2], W[1::2]], axis=0)          # out parity-major
    bp = jnp.concatenate([b[0::2], b[1::2]], axis=0)
    parts = []
    for g2 in range(UM):
        wg = Wp[:, g2::2]                                     # (O, Ch, p=j, q=i)
        wt = jnp.transpose(wg, (3, 2, 1, 0)).reshape(k * k * ch, O)   # (i,j,g1)
        parts.append(wt)
    Wg = jnp.stack(parts, axis=0).astype(jnp.bfloat16)        # (2, Kh, O)
    return Wg, bp.reshape(1, O).astype(jnp.float32)


def _pick_tile(bm, target):
    tm = min(target, bm)
    tm -= tm % 8
    while tm >= 8 and bm % tm != 0:
        tm -= 8
    return tm if tm >= 8 else bm


def _layer_impl(xg, Wg, b2, res, *, activation, k, tm):
    B, H, W, C = xg.shape
    O = b2.shape[-1]
    kh = k * k * (C // UM)
    BM = B * H * W
    A = _build_patches(xg, k)                                 # (2, BM, Kh) bf16
    tile = _pick_tile(BM, tm)
    grid = (BM // tile,)

    kern = functools.partial(_mag_conv_kernel, activation=activation,
                             o_half=O // UM, has_residual=res is not None)
    in_specs = [
        pl.BlockSpec((UM, tile, kh), lambda t: (0, t, 0)),    # A row tile
        pl.BlockSpec((UM, kh, O), lambda t: (0, 0, 0)),       # weights resident
        pl.BlockSpec((1, O), lambda t: (0, 0)),               # bias resident
    ]
    args = [A, Wg, b2]
    if res is not None:
        in_specs.append(pl.BlockSpec((tile, O), lambda t: (t, 0)))
        args.append(res.reshape(BM, O))

    out = pl.pallas_call(
        kern,
        out_shape=jax.ShapeDtypeStruct((BM, O), jnp.float32),
        grid_spec=pltpu.PrefetchScalarGridSpec(
            num_scalar_prefetch=0,
            grid=grid,
            in_specs=in_specs,
            out_specs=pl.BlockSpec((tile, O), lambda t: (t, 0)),
        ),
        compiler_params=pltpu.CompilerParams(
            dimension_semantics=("parallel",),                # megacore on v7x
            vmem_limit_bytes=48 * 1024 * 1024,
        ),
    )(*args)
    return out.reshape(B, H, W, O)


@functools.partial(jax.jit, static_argnames=("activation", "k", "tm"))
def _layer_no_res(xg, Wg, b2, *, activation, k, tm):
    return _layer_impl(xg, Wg, b2, None, activation=activation, k=k, tm=tm)


@functools.partial(jax.jit, static_argnames=("activation", "k", "tm"))
def _layer_with_res(xg, Wg, b2, res, *, activation, k, tm):
    return _layer_impl(xg, Wg, b2, res, activation=activation, k=k, tm=tm)


def pallas_resnet_forward(x_nchw, pblocks, pfinal, *, k=3, tm=DEFAULT_TM):
    assert k % 2 == 1, "replicate-pad conv path assumes odd kernel_size"
    xg = _to_group_major(x_nchw)
    for blk in pblocks:
        if blk["upscale"] is not None:
            res = _layer_no_res(xg, *blk["upscale"], activation=True, k=k, tm=tm)
        else:
            res = xg
        h = _layer_no_res(xg, *blk["layer1"], activation=True, k=k, tm=tm)
        xg = _layer_with_res(h, *blk["layer2"], res, activation=True, k=k, tm=tm)
    xg = _layer_no_res(xg, *pfinal, activation=False, k=k, tm=tm)
    return _from_group_major(xg)


# -------------------- pure-JAX reference (torch transcription) -------------- #

def _ref_conv_layer(x, W, b, activation):
    B, C, H, Wd = x.shape
    O, _, k, _ = W.shape
    pad = (k - 1) // 2
    xp = jnp.pad(x, ((0, 0), (0, 0), (pad, pad), (pad, pad)), mode="edge")
    pats = [xp[:, :, i:i + H, j:j + Wd] for i in range(k) for j in range(k)]
    out = jnp.stack(pats, axis=2).reshape(B, C, k, k, H, Wd)

    g = out.reshape(B, C // UM, UM, k, k, H, Wd)
    stds = g.max(axis=(1, 3, 4), keepdims=True) - g.min(axis=(1, 3, 4), keepdims=True)
    gn = g / (stds + EPS)
    t = gn.reshape(B, C, k, k, H, Wd)
    t = jnp.transpose(t, (0, 1, 4, 3, 5, 2)).reshape(B, C, H * k, Wd * k)

    y = jax.lax.conv_general_dilated(
        t, W, (k, k), "VALID",
        dimension_numbers=("NCHW", "OIHW", "NCHW"),
        precision=jax.lax.Precision.HIGHEST)
    y = y + b.reshape(1, O, 1, 1)
    if activation:
        y = jnp.where(y >= 0, y, NEG_SLOPE * y)

    s = stds[:, :, :, 0, 0]                                   # (B, 1, UM, H, W)
    return (y.reshape(B, O // UM, UM, H, Wd) * (s + EPS)).reshape(B, O, H, Wd)


@jax.jit
def ref_resnet_forward(x, blocks, final):
    for blk in blocks:
        res = x if blk["upscale"] is None else _ref_conv_layer(x, *blk["upscale"], activation=True)
        h = _ref_conv_layer(x, *blk["layer1"], activation=True)
        x = _ref_conv_layer(h, *blk["layer2"], activation=True) + res
    return _ref_conv_layer(x, *final, activation=False)


# ------------------------------ parameters ---------------------------------- #

def init_conv(key, cin, cout, k):
    k1, k2 = jax.random.split(key)
    bound = 1.0 / np.sqrt(cin * k * k)
    W = jax.random.uniform(k1, (cout, cin, k, k), jnp.float32, -bound, bound)
    b = jax.random.uniform(k2, (cout,), jnp.float32, -bound, bound)
    return W, b


def build_resnet_params(key, in_ch, out_ch, k):
    blocks = []
    cin = in_ch
    for h in HIDDEN_DIMS:
        key, k1, k2, k3 = jax.random.split(key, 4)
        blocks.append({
            "layer1": init_conv(k1, cin, h, k),
            "layer2": init_conv(k2, h, h, k),
            "upscale": init_conv(k3, cin, h, k) if cin != h else None,
        })
        cin = h
    key, kf = jax.random.split(key)
    return blocks, init_conv(kf, cin, out_ch, k)


def convert_resnet_params(blocks, final):
    pblocks = []
    for blk in blocks:
        pblocks.append({
            "layer1": convert_conv_params(*blk["layer1"]),
            "layer2": convert_conv_params(*blk["layer2"]),
            "upscale": (convert_conv_params(*blk["upscale"])
                        if blk["upscale"] is not None else None),
        })
    return pblocks, convert_conv_params(*final)


# --------------------------------- main -------------------------------------- #

if __name__ == "__main__":
    B, C_IN, C_OUT, H, K = 2, 4, 2, 16, 3

    root = jax.random.PRNGKey(0)
    root, kx = jax.random.split(root)
    x = jax.random.normal(kx, (B, C_IN, H, H), jnp.float32)

    blocks, final = build_resnet_params(root, C_IN, C_OUT, K)
    pblocks, pfinal = convert_resnet_params(blocks, final)

    out = jax.block_until_ready(pallas_resnet_forward(x, pblocks, pfinal, k=K))
    assert out.shape == (B, C_OUT, H, H), out.shape

    ref = jax.block_until_ready(ref_resnet_forward(x, blocks, final))
    # bf16 MXU inputs + bf16 range stats across 16 stacked layers -> compare
    # with a norm-relative tolerance (a real indexing/layout bug gives O(1)).
    err = float(jnp.linalg.norm(out - ref) / (jnp.linalg.norm(ref) + 1e-12))
    assert err < 0.1, f"relative error too large: {err}"

    print("KERNEL_OK")
</pallas_src>

<mosaic_0001>
module attributes {stable_mosaic.version = 11 : i64} {
  func.func @_mag_conv_kernel(%arg0: i32, %arg1: memref<2x256x18xbf16, #tpu.memory_space<vmem>>, %arg2: memref<2x18x32xbf16, #tpu.memory_space<vmem>>, %arg3: memref<1x32xf32, #tpu.memory_space<vmem>>, %arg4: memref<256x32xf32, #tpu.memory_space<vmem>>) attributes {dimension_semantics = [#tpu.dimension_semantics<parallel>], iteration_bounds = array<i64: 2>, scalar_prefetch = 0 : i64, scratch_operands = 0 : i64, tpu.core_type = #tpu.core_type<tc>, window_params = [{transform_indices = @transform_0, window_bounds = array<i64: 2, 256, 18>}, {pipeline_mode = #tpu.pipeline_mode<synchronous>, transform_indices = @transform_1, window_bounds = array<i64: 2, 18, 32>}, {pipeline_mode = #tpu.pipeline_mode<synchronous>, transform_indices = @transform_2, window_bounds = array<i64: 1, 32>}, {transform_indices = @transform_3, window_bounds = array<i64: 256, 32>}]} {
    %c0 = arith.constant 0 : index
    %c0_0 = arith.constant 0 : index
    %c0_1 = arith.constant 0 : index
    %0 = vector.load %arg1[%c0, %c0_0, %c0_1] : memref<2x256x18xbf16, #tpu.memory_space<vmem>>, vector<1x256x18xbf16>
    %1 = vector.shape_cast %0 : vector<1x256x18xbf16> to vector<256x18xbf16>
    %c1 = arith.constant 1 : index
    %c0_2 = arith.constant 0 : index
    %c0_3 = arith.constant 0 : index
    %2 = vector.load %arg1[%c1, %c0_2, %c0_3] : memref<2x256x18xbf16, #tpu.memory_space<vmem>>, vector<1x256x18xbf16>
    %3 = vector.shape_cast %2 : vector<1x256x18xbf16> to vector<256x18xbf16>
    %4 = arith.extf %1 : vector<256x18xbf16> to vector<256x18xf32>
    %5 = arith.extf %3 : vector<256x18xbf16> to vector<256x18xf32>
    %cst = arith.constant dense<0xFF800000> : vector<256xf32>
    %6 = vector.multi_reduction <maximumf>, %4, %cst [1] : vector<256x18xf32> to vector<256xf32>
    %7 = vector.shape_cast %6 : vector<256xf32> to vector<256x1xf32>
    %cst_4 = arith.constant dense<0x7F800000> : vector<256xf32>
    %8 = vector.multi_reduction <minimumf>, %4, %cst_4 [1] : vector<256x18xf32> to vector<256xf32>
    %9 = vector.shape_cast %8 : vector<256xf32> to vector<256x1xf32>
    %10 = arith.subf %7, %9 : vector<256x1xf32>
    %cst_5 = arith.constant 9.99999997E-7 : f32
    %11 = vector.broadcast %cst_5 : f32 to vector<256x1xf32>
    %12 = arith.addf %10, %11 : vector<256x1xf32>
    %cst_6 = arith.constant dense<0xFF800000> : vector<256xf32>
    %13 = vector.multi_reduction <maximumf>, %5, %cst_6 [1] : vector<256x18xf32> to vector<256xf32>
    %14 = vector.shape_cast %13 : vector<256xf32> to vector<256x1xf32>
    %cst_7 = arith.constant dense<0x7F800000> : vector<256xf32>
    %15 = vector.multi_reduction <minimumf>, %5, %cst_7 [1] : vector<256x18xf32> to vector<256xf32>
    %16 = vector.shape_cast %15 : vector<256xf32> to vector<256x1xf32>
    %17 = arith.subf %14, %16 : vector<256x1xf32>
    %cst_8 = arith.constant 9.99999997E-7 : f32
    %18 = vector.broadcast %cst_8 : f32 to vector<256x1xf32>
    %19 = arith.addf %17, %18 : vector<256x1xf32>
    %20 = tpu.reciprocal %12 : vector<256x1xf32> -> vector<256x1xf32>
    %21 = tpu.reciprocal %19 : vector<256x1xf32> -> vector<256x1xf32>
    %c0_9 = arith.constant 0 : index
    %c0_10 = arith.constant 0 : index
    %c0_11 = arith.constant 0 : index
    %22 = vector.load %arg2[%c0_9, %c0_10, %c0_11] : memref<2x18x32xbf16, #tpu.memory_space<vmem>>, vector<1x18x32xbf16>
    %23 = vector.shape_cast %22 : vector<1x18x32xbf16> to vector<18x32xbf16>
    %cst_12 = arith.constant dense<0.000000e+00> : vector<256x32xf32>
    %24 = tpu.matmul %1, %23, %cst_12 {dimension_numbers = #tpu.dot_dimension_numbers<[1], [0], [0], [1], [0, 0, 1, 1], [], []>} : vector<256x18xbf16>, vector<18x32xbf16>, vector<256x32xf32> -> vector<256x32xf32>
    %c1_13 = arith.constant 1 : index
    %c0_14 = arith.constant 0 : index
    %c0_15 = arith.constant 0 : index
    %25 = vector.load %arg2[%c1_13, %c0_14, %c0_15] : memref<2x18x32xbf16, #tpu.memory_space<vmem>>, vector<1x18x32xbf16>
    %26 = vector.shape_cast %25 : vector<1x18x32xbf16> to vector<18x32xbf16>
    %cst_16 = arith.constant dense<0.000000e+00> : vector<256x32xf32>
    %27 = tpu.matmul %3, %26, %cst_16 {dimension_numbers = #tpu.dot_dimension_numbers<[1], [0], [0], [1], [0, 0, 1, 1], [], []>} : vector<256x18xbf16>, vector<18x32xbf16>, vector<256x32xf32> -> vector<256x32xf32>
    %28 = vector.broadcast %20 : vector<256x1xf32> to vector<256x32xf32>
    %29 = arith.mulf %24, %28 : vector<256x32xf32>
    %30 = vector.broadcast %21 : vector<256x1xf32> to vector<256x32xf32>
    %31 = arith.mulf %27, %30 : vector<256x32xf32>
    %32 = arith.addf %29, %31 : vector<256x32xf32>
    %c0_17 = arith.constant 0 : index
    %c0_18 = arith.constant 0 : index
    %33 = vector.load %arg3[%c0_17, %c0_18] : memref<1x32xf32, #tpu.memory_space<vmem>>, vector<1x32xf32>
    %34 = vector.broadcast %33 : vector<1x32xf32> to vector<256x32xf32>
    %35 = arith.addf %32, %34 : vector<256x32xf32>
    %cst_19 = arith.constant 0.000000e+00 : f32
    %36 = vector.broadcast %cst_19 : f32 to vector<256x32xf32>
    %37 = arith.cmpf oge, %35, %36 : vector<256x32xf32>
    %cst_20 = arith.constant 0.00999999977 : f32
    %38 = vector.broadcast %cst_20 : f32 to vector<256x32xf32>
    %39 = arith.mulf %38, %35 : vector<256x32xf32>
    %40 = arith.select %37, %35, %39 : vector<256x32xi1>, vector<256x32xf32>
    %41 = tpu.iota {dimensions = array<i32: 1>} : vector<256x32xi32>
    %c16_i32 = arith.constant 16 : i32
    %42 = vector.broadcast %c16_i32 : i32 to vector<256x32xi32>
    %43 = arith.cmpi slt, %41, %42 : vector<256x32xi32>
    %44 = vector.shape_cast %12 : vector<256x1xf32> to vector<256x1xf32>
    %45 = vector.broadcast %44 : vector<256x1xf32> to vector<256x32xf32>
    %46 = vector.shape_cast %19 : vector<256x1xf32> to vector<256x1xf32>
    %47 = vector.broadcast %46 : vector<256x1xf32> to vector<256x32xf32>
    %48 = arith.select %43, %45, %47 : vector<256x32xi1>, vector<256x32xf32>
    %49 = arith.mulf %40, %48 : vector<256x32xf32>
    %c0_21 = arith.constant 0 : index
    %c0_22 = arith.constant 0 : index
    %50 = vector.load %arg4[%c0_21, %c0_22] : memref<256x32xf32, #tpu.memory_space<vmem>>, vector<256x32xf32>
    tpu.vector_store %arg4[%c0_21, %c0_22], %49 {strides = array<i32>} : memref<256x32xf32, #tpu.memory_space<vmem>>, vector<256x32xf32>,
    return
  }
  func.func @transform_0(%arg0: i32) -> (i32, i32, i32) {
    %c0_i32 = arith.constant 0 : i32
    %c0_i32_0 = arith.constant 0 : i32
    %c0_i32_1 = arith.constant 0 : i32
    return %c0_i32, %arg0, %c0_i32_0 : i32, i32, i32
  }
  func.func @transform_1(%arg0: i32) -> (i32, i32, i32) {
    %c0_i32 = arith.constant 0 : i32
    %c0_i32_0 = arith.constant 0 : i32
    %c0_i32_1 = arith.constant 0 : i32
    %c0_i32_2 = arith.constant 0 : i32
    return %c0_i32, %c0_i32_0, %c0_i32_1 : i32, i32, i32
  }
  func.func @transform_2(%arg0: i32) -> (i32, i32) {
    %c0_i32 = arith.constant 0 : i32
    %c0_i32_0 = arith.constant 0 : i32
    %c0_i32_1 = arith.constant 0 : i32
    return %c0_i32, %c0_i32_0 : i32, i32
  }
  func.func @transform_3(%arg0: i32) -> (i32, i32) {
    %c0_i32 = arith.constant 0 : i32
    %c0_i32_0 = arith.constant 0 : i32
    return %arg0, %c0_i32 : i32, i32
  }
}

</mosaic_0001>

<bundles_post_ra>
// kernel: _layer_no_res.1
= control target key start
LH: loop header
LB: loop body
LE: loop exit
PB: predicated region body
PF: predicated region fallthrough
CT: control target
= control target key end

     0   :  { %8 = vsyncpa [#allocation4], 0  ;;  %s4360_s0 = inlined_call_operand.vmem [shape: bf16[2,512,18], index: 0, kind: input, shape index: {}]   ;;  %s4361_s1 = inlined_call_operand.vmem [shape: bf16[2,18,32], index: 1, kind: input, shape index: {}]   ;;  %s4362_s2 = inlined_call_operand.vmem [shape: f32[1,32], index: 2, kind: input, shape index: {}]   ;;  %s4363_s3 = inlined_call_operand.hbm [shape: f32[512,32], index: 3, kind: output, shape index: {}]  }
   0x1   :  { %10 = vsyncpa [#allocation4 + $0x1], 0  ;;  %s2749_s12 = smov 0   ;;  %s2751_s13 = smov 0  }
   0x2   :  { %s2753_s14 = smov 0   ;;  %s2755_s15 = smov 0  }
   0x3 LB: > { %s2194_s16 = sadd.s32 4294967295, %s2724_s15   ;;  %s2195_s17 = sadd.s32 4294967294, %s2724_s15   ;;  %s2724_s15 = sphi %s2755_s15, %s4572_s15   ;;  %s2720_s14 = sphi %s2753_s14, %s4571_s14   ;;  %s2716_s13 = sphi %s2751_s13, %s4570_s13   ;;  %s2712_s12 = sphi %s2749_s12, %s4569_s12  }
   0x4   : > { %s2772_s18 = sadd.s32 1, %s2724_s15   ;;  %s23_s19 = sadd.s32 1, %s2720_s14 }
   0x5   : > { %s20_s20 = ssub.s32 %s2724_s15, %s2772_s18  ;;  %p30_p0 = scmp.ne.s32.totalorder %s2720_s14, %s2716_s13 }
   0x6   : > { %p21_p1 = scmp.eq.s32.totalorder %s20_s20, 0  ;;  %p31_p2 = scmp.eq.s32.totalorder %s2724_s15, 0 }
   0x7   : > { %p102_p3 = scmp.eq.s32.totalorder %s2194_s16, 1  ;;  %p107_p4 = scmp.ne.s32.totalorder %s2716_s13, %s2712_s12 }
   0x8   : > { %s2785_s21 = scalar_select %p21_p1, %s2720_s14, %s23_s19  }
   0x9   : > { %p32_p5 = por %p31_p2, %p30_p0  ;;  %p2787_p6 = por %p102_p3, %p30_p0 }
   0xa   : > { %p108_p7 = scmp.eq.s32.totalorder %s2195_s17, 1  ;;  %p2197_p9 = scmp.ge.s32.totalorder %s2724_s15, 2 }
   0xc   : > { %p2791_p8 = por %p108_p7, %p107_p4  ;;  %130 = sbr.rel (%p2197_p9) target bundleno = 39 (0x27), region = 24 }
  0x13   : > { %133 = sbr.rel (!%p32_p5) target bundleno = 39 (0x27), region = 28  ;;  %s135_s24 = sand.u32 (%p32_p5), 1, %s2720_s14  }
  0x14   : > { %s2313_s25 = sshll.u32 (%p32_p5), %s2724_s15, 7  ;;  %s2198_s26 = sshll.u32 (%p32_p5), %s135_s24, 8 }
  0x15   : > { %s2803_s29 = scalar_lea.vmem (%p32_p5), %s4360_s0, %s2313_s25  ;;  %s2808_s30 = scalar_lea.vmem (%p32_p5), [#allocation2], %s2198_s26 }
  0x16   : > { %v156_v0 = vld [vmem:[%s2803_s29] sm:$0xff] (%p32_p5)   ;;  %v160_v1 = vld [vmem:[%s2803_s29 + $0x8] sm:$0xff] (%p32_p5)   ;;  %v164_v2 = vld [vmem:[%s2803_s29 + $0x10] sm:$0xff] (%p32_p5)  }
  0x17   : > { %157 = vst [vmem:[%s2808_s30] sm:$0xff] (%p32_p5), %v156_v0   ;;  %161 = vst [vmem:[%s2808_s30 + $0x8] sm:$0xff] (%p32_p5), %v160_v1   ;;  %v168_v3 = vld [vmem:[%s2803_s29 + $0x18] sm:$0xff] (%p32_p5)   ;;  %v172_v4 = vld [vmem:[%s2803_s29 + $0x20] sm:$0xff] (%p32_p5)  }
  0x18   : > { %165 = vst [vmem:[%s2808_s30 + $0x10] sm:$0xff] (%p32_p5), %v164_v2   ;;  %v176_v5 = vld [vmem:[%s2803_s29 + $0x28] sm:$0xff] (%p32_p5)   ;;  %169 = vst [vmem:[%s2808_s30 + $0x18] sm:$0xff] (%p32_p5), %v168_v3   ;;  %v180_v6 = vld [vmem:[%s2803_s29 + $0x30] sm:$0xff] (%p32_p5)  }
  0x19   : > { %173 = vst [vmem:[%s2808_s30 + $0x20] sm:$0xff] (%p32_p5), %v172_v4   ;;  %177 = vst [vmem:[%s2808_s30 + $0x28] sm:$0xff] (%p32_p5), %v176_v5   ;;  %v184_v7 = vld [vmem:[%s2803_s29 + $0x38] sm:$0xff] (%p32_p5)   ;;  %v188_v8 = vld [vmem:[%s2803_s29 + $0x40] sm:$0xff] (%p32_p5)  }
  0x1a   : > { %181 = vst [vmem:[%s2808_s30 + $0x30] sm:$0xff] %v180_v6   ;;  %185 = vst [vmem:[%s2808_s30 + $0x38] sm:$0xff] %v184_v7   ;;  %v192_v9 = vld [vmem:[%s2803_s29 + $0x48] sm:$0xff]   ;;  %v196_v10 = vld [vmem:[%s2803_s29 + $0x50] sm:$0xff]  }
  0x1b   : > { %189 = vst [vmem:[%s2808_s30 + $0x40] sm:$0xff] %v188_v8   ;;  %v200_v11 = vld [vmem:[%s2803_s29 + $0x58] sm:$0xff]   ;;  %193 = vst [vmem:[%s2808_s30 + $0x48] sm:$0xff] %v192_v9   ;;  %v204_v12 = vld [vmem:[%s2803_s29 + $0x60] sm:$0xff]  }
  0x1c   : > { %197 = vst [vmem:[%s2808_s30 + $0x50] sm:$0xff] %v196_v10   ;;  %201 = vst [vmem:[%s2808_s30 + $0x58] sm:$0xff] %v200_v11   ;;  %v208_v13 = vld [vmem:[%s2803_s29 + $0x68] sm:$0xff]   ;;  %v212_v14 = vld [vmem:[%s2803_s29 + $0x70] sm:$0xff]  }
  0x1d   : > { %205 = vst [vmem:[%s2808_s30 + $0x60] sm:$0xff] %v204_v12   ;;  %209 = vst [vmem:[%s2808_s30 + $0x68] sm:$0xff] %v208_v13   ;;  %v216_v15 = vld [vmem:[%s2803_s29 + $0x78] sm:$0xff]   ;;  %v220_v16 = vld [vmem:[%s2803_s29 + $0x100] sm:$0xff]  }
  0x1e   : > { %213 = vst [vmem:[%s2808_s30 + $0x70] sm:$0xff] %v212_v14   ;;  %v224_v17 = vld [vmem:[%s2803_s29 + $0x108] sm:$0xff]   ;;  %217 = vst [vmem:[%s2808_s30 + $0x78] sm:$0xff] %v216_v15   ;;  %v228_v18 = vld [vmem:[%s2803_s29 + $0x110] sm:$0xff]  }
  0x1f   : > { %221 = vst [vmem:[%s2808_s30 + $0x80] sm:$0xff] %v220_v16   ;;  %225 = vst [vmem:[%s2808_s30 + $0x88] sm:$0xff] %v224_v17   ;;  %v232_v19 = vld [vmem:[%s2803_s29 + $0x118] sm:$0xff]   ;;  %v236_v20 = vld [vmem:[%s2803_s29 + $0x120] sm:$0xff]  }
  0x20   : > { %229 = vst [vmem:[%s2808_s30 + $0x90] sm:$0xff] %v228_v18   ;;  %233 = vst [vmem:[%s2808_s30 + $0x98] sm:$0xff] %v232_v19   ;;  %v240_v21 = vld [vmem:[%s2803_s29 + $0x128] sm:$0xff]   ;;  %v244_v22 = vld [vmem:[%s2803_s29 + $0x130] sm:$0xff]  }
  0x21   : > { %237 = vst [vmem:[%s2808_s30 + $0xa0] sm:$0xff] %v236_v20   ;;  %v248_v23 = vld [vmem:[%s2803_s29 + $0x138] sm:$0xff]   ;;  %241 = vst [vmem:[%s2808_s30 + $0xa8] sm:$0xff] %v240_v21   ;;  %v252_v24 = vld [vmem:[%s2803_s29 + $0x140] sm:$0xff]  }
  0x22   : > { %245 = vst [vmem:[%s2808_s30 + $0xb0] sm:$0xff] %v244_v22   ;;  %249 = vst [vmem:[%s2808_s30 + $0xb8] sm:$0xff] %v248_v23   ;;  %v256_v25 = vld [vmem:[%s2803_s29 + $0x148] sm:$0xff]   ;;  %v260_v26 = vld [vmem:[%s2803_s29 + $0x150] sm:$0xff]  }
  0x23   : > { %253 = vst [vmem:[%s2808_s30 + $0xc0] sm:$0xff] %v252_v24   ;;  %257 = vst [vmem:[%s2808_s30 + $0xc8] sm:$0xff] %v256_v25   ;;  %v264_v27 = vld [vmem:[%s2803_s29 + $0x158] sm:$0xff]   ;;  %v268_v28 = vld [vmem:[%s2803_s29 + $0x160] sm:$0xff]  }
  0x24   : > { %261 = vst [vmem:[%s2808_s30 + $0xd0] sm:$0xff] %v260_v26   ;;  %v272_v29 = vld [vmem:[%s2803_s29 + $0x168] sm:$0xff]   ;;  %265 = vst [vmem:[%s2808_s30 + $0xd8] sm:$0xff] %v264_v27   ;;  %v276_v30 = vld [vmem:[%s2803_s29 + $0x170] sm:$0xff]  }
  0x25   : > { %269 = vst [vmem:[%s2808_s30 + $0xe0] sm:$0xff] %v268_v28   ;;  %273 = vst [vmem:[%s2808_s30 + $0xe8] sm:$0xff] %v272_v29   ;;  %v280_v31 = vld [vmem:[%s2803_s29 + $0x178] sm:$0xff]  }
  0x26   : > { %277 = vst [vmem:[%s2808_s30 + $0xf0] sm:$0xff] %v276_v30   ;;  %281 = vst [vmem:[%s2808_s30 + $0xf8] sm:$0xff] %v280_v31  }
  0x27 PF: > { %p2201_p10 = scmp.ge.s32.totalorder %s2724_s15, 1  ;;  %p433_p11 = scmp.lt.s32.totalorder %s2724_s15, 3 }
  0x29   : > { %p434_p12 = pnand %p2201_p10, %p433_p11 }
  0x2b   : > { %437 = sbr.rel (%p434_p12) target bundleno = 512 (0x200), region = 69 }
  0x32   : > { %v2466_v32 = vld [vmem:[%s4361_s1] sm:$0xff]   ;;  %s440_s6 = sand.u32 1, %s2716_s13   ;;  %vm1312_vm0 = vcmask 1040384   ;;  %v2467_v33 = vld [vmem:[%s4361_s1 + $0x8] ss:$0 sps:$4 sm:$0x11]  }
  0x33   : > { %s2879_s7 = sshll.u32 %s440_s6, 8  ;;  %2351 = vmatprep.subr.bf16.mxu0 %v2466_v32  ;;  %vm595_vm1 = vcmask 146432   ;;  %v1314_v39 = vsel %vm1312_vm0, %v2467_v33, 0  ;;  %v2484_v48 = vld [vmem:[%s4361_s1 + $0xc] sm:$0xff]   ;;  %vm2080_vm3 = vcmask 261120   ;;  %s2314_s27 = sshll.u32 %s2194_s16, 12 }
  0x34   : > { %2352 = vmatpush3.bf16.msra.mxu0 %v2466_v32  ;;  %s2885_s10 = scalar_lea.vmem [#allocation2], %s2879_s7  ;;  %2387 = vmatprep.subr.bf16.mxu1 %v2484_v48  ;;  %v2485_v50 = vld [vmem:[%s4361_s1 + $0x14] ss:$0 sps:$4 sm:$0x11]   ;;  %s3975_s26 = scalar_lea.vmem [#allocation3], %s2879_s7 }
  0x35   : > { %v2888_v34 = vld [vmem:[%s2885_s10 + $0x8] sm:$0xff]   ;;  %v2891_v35 = vld [vmem:[%s2885_s10] sm:$0xff]   ;;  %2423 = vmatprep.subr.msk.bf16.mxu0 %vm1312_vm0, %v2467_v33  ;;  %v2900_v41 = vld [vmem:[%s2885_s10 + $0x10] sm:$0xff]   ;;  %2388 = vmatpush3.bf16.msra.mxu1 %v2484_v48  ;;  %v1619_v17 = vsel %vm1312_vm0, %v2485_v50, 0  ;;  %s2127_s28 = sshll.u32 %s3975_s26, 4  ;;  %s4308_s30 = scalar_lea.hbm %s4363_s3, %s2314_s27  ;;  %s4310_s28 = int_to_ptr.vmem [resolvable:$true] %s2127_s28 }
  0x36   : > { %v533_v36 = vunpack.c.l.bf16 %v2888_v34  ;;  %v531_v37 = vunpack.c.l.bf16 %v2891_v35  ;;  %v534_v38 = vunpack.c.h.bf16 %v2888_v34  ;;  %v532_v40 = vunpack.c.h.bf16 %v2891_v35  ;;  %2355 = vmatprep.mubr.msk.bf16.mxu0 %vm595_vm1, %v2891_v35  ;;  %v2922_v49 = vld [vmem:[%s2885_s10 + $0x18] sm:$0xff]   ;;  %v2940_v55 = vld [vmem:[%s2885_s10 + $0x20] sm:$0xff]   ;;  %2424 = vmatprep.subr.msk.bf16.mxu1 %vm1312_vm0, %v2485_v50  ;;  %v2952_v60 = vld [vmem:[%s2885_s10 + $0x28] sm:$0xff]   ;;  %s4318_s4 = scalar_lea.sflag [#allocation4], %s440_s6  ;;  %s2662_s5 = scalar_lea.vmem %s4310_s28, 4096 }
  0x37   : > { %v536_v46 = vunpack.c.h.bf16 %v2900_v41  ;;  %v535_v47 = vunpack.c.l.bf16 %v2900_v41  ;;  %v538_v53 = vunpack.c.h.bf16 %v2922_v49  ;;  %v537_v54 = vunpack.c.l.bf16 %v2922_v49  ;;  %v2967_v1 = vld [vmem:[%s2885_s10 + $0x30] sm:$0xff]   ;;  %v2978_v6 = vld [vmem:[%s2885_s10 + $0x38] sm:$0xff]   ;;  %v2991_v11 = vld [vmem:[%s2885_s10 + $0x40] sm:$0xff]   ;;  %p2663_p13 = scmp.ne.s32.totalorder %s4310_s28, %s2662_s5  ;;  %s2726_s7 = smov [#allocation3]  }
  0x38   : > { %v602_v42 = vsel %vm595_vm1, %v533_v36, -inf  ;;  %v596_v43 = vsel %vm595_vm1, %v531_v37, -inf  ;;  %2354 = vmatpush3.bf16.msra.mxu0 %v1314_v39  ;;  %v605_v44 = vsel %vm595_vm1, %v534_v38, -inf  ;;  %v599_v45 = vsel %vm595_vm1, %v532_v40, -inf  ;;  %v3004_v16 = vld [vmem:[%s2885_s10 + $0x80] sm:$0xff]   ;;  %v3008_v18 = vld [vmem:[%s2885_s10 + $0x88] sm:$0xff]  }
  0x39   : > { %603 = vmax.xlane.f32.xlu1 %v602_v42  ;;  %597 = vmax.xlane.f32.xlu0 %v596_v43  ;;  %v611_v51 = vsel %vm595_vm1, %v536_v46, -inf  ;;  %v608_v52 = vsel %vm595_vm1, %v535_v47, -inf  ;;  %v617_v56 = vsel %vm595_vm1, %v538_v53, -inf  ;;  %v614_v57 = vsel %vm595_vm1, %v537_v54, -inf  ;;  %v3011_v19 = vld [vmem:[%s2885_s10 + $0x48] sm:$0xff]   ;;  %v3014_v20 = vld [vmem:[%s2885_s10 + $0x90] sm:$0xff]   ;;  %p2664_p0 = pnand %p2663_p13, %p2787_p6 }
  0x3a   : > { %v540_v58 = vunpack.c.h.bf16 %v2940_v55  ;;  %v539_v59 = vunpack.c.l.bf16 %v2940_v55  ;;  %v542_v63 = vunpack.c.h.bf16 %v2952_v60  ;;  %v541_v0 = vunpack.c.l.bf16 %v2952_v60  ;;  %2390 = vmatpush3.bf16.msra.mxu1 %v1619_v17  ;;  %2391 = vmatprep.mubr.msk.bf16.mxu1 %vm595_vm1, %v3004_v16  ;;  %v3031_v25 = vld [vmem:[%s2885_s10 + $0x50] sm:$0xff]   ;;  %v3046_v30 = vld [vmem:[%s2885_s10 + $0x98] sm:$0xff]   ;;  %v3052_v32 = vld [vmem:[%s2885_s10 + $0xa0] sm:$0xff]   ;;  %s2666_s8 = sshll.u32 %s2726_s7, 4  ;;  %s2667_s8 = int_to_ptr.vmem [resolvable:$false] %s2666_s8 }
  0x3b   : > { %2356 = vmatmul.mubr.msk.bf16.vlgmr.msra.gmra.mrb[0].mxu0 %vm595_vm1, %v2888_v34  ;;  %v544_v4 = vunpack.c.h.bf16 %v2967_v1  ;;  %v543_v5 = vunpack.c.l.bf16 %v2967_v1  ;;  %v546_v9 = vunpack.c.h.bf16 %v2978_v6  ;;  %v545_v10 = vunpack.c.l.bf16 %v2978_v6  ;;  %v3049_v31 = vld [vmem:[%s2885_s10 + $0x58] sm:$0xff]   ;;  %p2665_p1 = pneg %p2664_p0  ;;  %s2668_s9 = scalar_lea.vmem %s2667_s8, 8192 }
  0x3c   : > { %2359 = vmatprep.mubr.msk.bf16.mxu0 %vm595_vm1, %v2900_v41  ;;  %v623_v61 = vsel %vm595_vm1, %v540_v58, -inf  ;;  %v620_v62 = vsel %vm595_vm1, %v539_v59, -inf  ;;  %v629_v2 = vsel %vm595_vm1, %v542_v63, -inf  ;;  %v626_v3 = vsel %vm595_vm1, %v541_v0, -inf  ;;  %v3198_v41 = vld [vmem:[%s2885_s10 + $0xf0] sm:$0xff]   ;;  %p2669_p2 = scmp.lt.s32.totalorder %s4310_s28, %s2667_s8  ;;  %p2670_p3 = scmp.lt.s32.totalorder %s2668_s9, %s2662_s5 }
  0x3d   : > { %606 = vmax.xlane.f32.xlu1 %v605_v44  ;;  %600 = vmax.xlane.f32.xlu0 %v599_v45  ;;  %v635_v7 = vsel %vm595_vm1, %v544_v4, -inf  ;;  %v632_v8 = vsel %vm595_vm1, %v543_v5, -inf  ;;  %v548_v12 = vunpack.c.h.bf16 %v2991_v11  ;;  %v641_v13 = vsel %vm595_vm1, %v546_v9, -inf  ;;  %v3067_v44 = vld [vmem:[%s2885_s10 + $0x60] sm:$0xff]  }
  0x3e   : > { %v638_v14 = vsel %vm595_vm1, %v545_v10, -inf  ;;  %v547_v15 = vunpack.c.l.bf16 %v2991_v11  ;;  %v550_v23 = vunpack.c.h.bf16 %v3011_v19  ;;  %v549_v24 = vunpack.c.l.bf16 %v3011_v19  ;;  %2392 = vmatmul.mubr.msk.bf16.vlgmr.msra.gmra.mrb[0].mxu1 %vm595_vm1, %v3008_v18  ;;  %p2671_p4 = por %p2670_p3, %p2669_p2 }
  0x3f   : > { %v647_v21 = vsel %vm595_vm1, %v548_v12, -inf  ;;  %2395 = vmatprep.mubr.msk.bf16.mxu1 %vm595_vm1, %v3014_v20  ;;  %v552_v28 = vunpack.c.h.bf16 %v3031_v25  ;;  %v551_v29 = vunpack.c.l.bf16 %v3031_v25  ;;  %v554_v42 = vunpack.c.h.bf16 %v3049_v31 }
  0x40   : > { %v644_v22 = vsel %vm595_vm1, %v547_v15, -inf  ;;  %v653_v26 = vsel %vm595_vm1, %v550_v23, -inf  ;;  %v650_v27 = vsel %vm595_vm1, %v549_v24, -inf  ;;  %v553_v43 = vunpack.c.l.bf16 %v3049_v31  ;;  %p2672_p5 = pnand %p2671_p4, %p2665_p1 }
  0x41   : > { %612 = vmax.xlane.f32.xlu1 %v611_v51  ;;  %609 = vmax.xlane.f32.xlu0 %v608_v52  ;;  %v659_v33 = vsel %vm595_vm1, %v552_v28, -inf  ;;  %v656_v39 = vsel %vm595_vm1, %v551_v29, -inf  ;;  %v665_v45 = vsel %vm595_vm1, %v554_v42, -inf  ;;  %v556_v50 = vunpack.c.h.bf16 %v3067_v44  ;;  %v3082_v52 = vld [vmem:[%s2885_s10 + $0xa8] sm:$0xff]  }
  0x42   : > { %v662_v48 = vsel %vm595_vm1, %v553_v43, -inf  ;;  %v555_v51 = vunpack.c.l.bf16 %v3067_v44  ;;  %v698_v35 = vsel %vm595_vm1, %v533_v36, inf  ;;  %v713_v34 = vsel %vm595_vm1, %v538_v53, inf }
  0x43   : > { %2360 = vmatmul.mubr.msk.bf16.gmra.mrb[4].mxu0 %vm595_vm1, %v2922_v49  ;;  %v710_v36 = vsel %vm595_vm1, %v537_v54, inf  ;;  %v725_v49 = vsel %vm595_vm1, %v542_v63, inf  ;;  %v722_v53 = vsel %vm595_vm1, %v541_v0, inf  ;;  %v3217_v54 = vld [vmem:[%s2885_s10 + $0xf8] sm:$0xff]   ;;  %v743_v63 = vsel %vm595_vm1, %v548_v12, inf }
  0x44   : > { %2363 = vmatprep.mubr.msk.bf16.mxu0 %vm595_vm1, %v2940_v55  ;;  %v731_v55 = vsel %vm595_vm1, %v544_v4, inf  ;;  %v740_v0 = vsel %vm595_vm1, %v547_v15, inf  ;;  %v746_v4 = vsel %vm595_vm1, %v549_v24, inf  ;;  %v764_v12 = vsel %vm595_vm1, %v555_v51, inf }
  0x45   : > { %618 = vmax.xlane.f32.xlu1 %v617_v56  ;;  %615 = vmax.xlane.f32.xlu0 %v614_v57  ;;  %v3085_v56 = vld [vmem:[%s2885_s10 + $0x68] sm:$0xff]   ;;  %v3088_v57 = vld [vmem:[%s2885_s10 + $0xb0] sm:$0xff]  }
  0x46   : > { %2396 = vmatmul.mubr.msk.bf16.gmra.mrb[4].mxu1 %vm595_vm1, %v3046_v30 }
  0x47   : > { %2399 = vmatprep.mubr.msk.bf16.mxu1 %vm595_vm1, %v3052_v32 }
  0x49   : > { %624 = vmax.xlane.f32.xlu1 %v623_v61  ;;  %621 = vmax.xlane.f32.xlu0 %v620_v62  ;;  %v671_v61 = vsel %vm595_vm1, %v556_v50, -inf  ;;  %v668_v62 = vsel %vm595_vm1, %v555_v51, -inf }
  0x4b   : > { %2364 = vmatmul.mubr.msk.bf16.gmra.mrb[8].mxu0 %vm595_vm1, %v2952_v60  ;;  %v734_v60 = vsel %vm595_vm1, %v545_v10, inf  ;;  %v758_v10 = vsel %vm595_vm1, %v553_v43, inf }
  0x4c   : > { %2367 = vmatprep.mubr.msk.bf16.mxu0 %vm595_vm1, %v2967_v1  ;;  %v749_v1 = vsel %vm595_vm1, %v550_v23, inf }
  0x4d   : > { %630 = vmax.xlane.f32.xlu1 %v629_v2  ;;  %627 = vmax.xlane.f32.xlu0 %v626_v3  ;;  %v558_v2 = vunpack.c.h.bf16 %v3085_v56  ;;  %v557_v3 = vunpack.c.l.bf16 %v3085_v56 }
  0x4e   : > { %2400 = vmatmul.mubr.msk.bf16.gmra.mrb[8].mxu1 %vm595_vm1, %v3082_v52 }
  0x4f   : > { %2403 = vmatprep.mubr.msk.bf16.mxu1 %vm595_vm1, %v3088_v57  ;;  %v773_v15 = vsel %vm595_vm1, %v558_v2, inf }
  0x51   : > { %636 = vmax.xlane.f32.xlu1 %v635_v7  ;;  %633 = vmax.xlane.f32.xlu0 %v632_v8  ;;  %v3103_v7 = vld [vmem:[%s2885_s10 + $0x70] sm:$0xff]   ;;  %v677_v8 = vsel %vm595_vm1, %v558_v2, -inf  ;;  %v568_v2 = vunpack.c.h.bf16 %v3014_v20 }
  0x52   : > { %v559_v17 = vunpack.c.l.bf16 %v3103_v7 }
  0x53   : > { %2368 = vmatmul.mubr.msk.bf16.gmra.mrb[12].mxu0 %vm595_vm1, %v2978_v6  ;;  %v752_v6 = vsel %vm595_vm1, %v551_v29, inf  ;;  %v564_v29 = vunpack.c.h.bf16 %v3004_v16 }
  0x54   : > { %2371 = vmatprep.mubr.msk.bf16.mxu0 %vm595_vm1, %v2991_v11  ;;  %v767_v11 = vsel %vm595_vm1, %v556_v50, inf  ;;  %v776_v24 = vsel %vm595_vm1, %v559_v17, inf  ;;  %v565_v50 = vunpack.c.l.bf16 %v3008_v18 }
  0x55   : > { %642 = vmax.xlane.f32.xlu1 %v641_v13  ;;  %639 = vmax.xlane.f32.xlu0 %v638_v14  ;;  %v674_v13 = vsel %vm595_vm1, %v557_v3, -inf  ;;  %v560_v14 = vunpack.c.h.bf16 %v3103_v7 }
  0x57   : > { %v779_v23 = vsel %vm595_vm1, %v560_v14, inf }
  0x59   : > { %648 = vmax.xlane.f32.xlu1 %v647_v21  ;;  %645 = vmax.xlane.f32.xlu0 %v644_v22  ;;  %v3118_v21 = vld [vmem:[%s2885_s10 + $0xb8] sm:$0xff]  }
  0x5a   : > { %v3121_v22 = vld [vmem:[%s2885_s10 + $0x78] sm:$0xff]   ;;  %2404 = vmatmul.mubr.msk.bf16.gmra.mrb[12].mxu1 %vm595_vm1, %v3118_v21 }
  0x5b   : > { %2372 = vmatmul.mubr.msk.bf16.gmra.mrb[16].mxu0 %vm595_vm1, %v3011_v19  ;;  %v770_v19 = vsel %vm595_vm1, %v557_v3, inf  ;;  %v567_v3 = vunpack.c.l.bf16 %v3014_v20 }
  0x5c   : > { %2375 = vmatprep.mubr.msk.bf16.mxu0 %vm595_vm1, %v3031_v25 }
  0x5d   : > { %654 = vmax.xlane.f32.xlu1 %v653_v26  ;;  %651 = vmax.xlane.f32.xlu0 %v650_v27  ;;  %v3124_v26 = vld [vmem:[%s2885_s10 + $0xc0] sm:$0xff]   ;;  %v683_v27 = vsel %vm595_vm1, %v560_v14, -inf  ;;  %v864_v14 = vsel %vm595_vm1, %v567_v3, -inf }
  0x5e   : > { %2407 = vmatprep.mubr.msk.bf16.mxu1 %vm595_vm1, %v3124_v26 }
  0x61   : > { %660 = vmax.xlane.f32.xlu1 %v659_v33  ;;  %657 = vmax.xlane.f32.xlu0 %v656_v39  ;;  %v680_v33 = vsel %vm595_vm1, %v559_v17, -inf  ;;  %v562_v39 = vunpack.c.h.bf16 %v3121_v22  ;;  %v570_v17 = vunpack.c.h.bf16 %v3046_v30 }
  0x63   : > { %2376 = vmatmul.mubr.msk.bf16.gmra.mrb[20].mxu0 %vm595_vm1, %v3049_v31  ;;  %v785_v25 = vsel %vm595_vm1, %v562_v39, inf  ;;  %v563_v31 = vunpack.c.l.bf16 %v3004_v16 }
  0x64   : > { %2379 = vmatprep.mubr.msk.bf16.mxu0 %vm595_vm1, %v3067_v44  ;;  %v566_v44 = vunpack.c.h.bf16 %v3008_v18 }
  0x65   : > { %666 = vmax.xlane.f32.xlu1 %v665_v45  ;;  %663 = vmax.xlane.f32.xlu0 %v662_v48  ;;  %v561_v45 = vunpack.c.l.bf16 %v3121_v22  ;;  %v689_v48 = vsel %vm595_vm1, %v562_v39, -inf  ;;  %v852_v43 = vsel %vm595_vm1, %v563_v31, -inf  ;;  %v873_v39 = vsel %vm595_vm1, %v570_v17, -inf }
  0x66   : > { %v861_v51 = vsel %vm595_vm1, %v566_v44, -inf }
  0x69   : > { %672 = vmax.xlane.f32.xlu1 %v671_v61  ;;  %669 = vmax.xlane.f32.xlu0 %v668_v62  ;;  %v686_v61 = vsel %vm595_vm1, %v561_v45, -inf  ;;  %v3149_v62 = vld [vmem:[%s2885_s10 + $0xc8] sm:$0xff]  }
  0x6a   : > { %2408 = vmatmul.mubr.msk.bf16.gmra.mrb[16].mxu1 %vm595_vm1, %v3149_v62 }
  0x6b   : > { %2380 = vmatmul.mubr.msk.bf16.gmra.mrb[24].mxu0 %vm595_vm1, %v3085_v56  ;;  %v858_v56 = vsel %vm595_vm1, %v565_v50, -inf }
  0x6c   : > { %2383 = vmatprep.mubr.msk.bf16.mxu0 %vm595_vm1, %v3103_v7  ;;  %v867_v7 = vsel %vm595_vm1, %v568_v2, -inf }
  0x6d   : > { %678 = vmax.xlane.f32.xlu1 %v677_v8  ;;  %675 = vmax.xlane.f32.xlu0 %v674_v13  ;;  %v3152_v8 = vld [vmem:[%s2885_s10 + $0xd0] sm:$0xff]   ;;  %v695_v13 = vsel %vm595_vm1, %v532_v40, inf  ;;  %v3173_v40 = vld [vmem:[%s2885_s10 + $0xd8] sm:$0xff]  }
  0x6e   : > { %2411 = vmatprep.mubr.msk.bf16.mxu1 %vm595_vm1, %v3152_v8 }
  0x71   : > { %684 = vmax.xlane.f32.xlu1 %v683_v27  ;;  %681 = vmax.xlane.f32.xlu0 %v680_v33  ;;  %v692_v27 = vsel %vm595_vm1, %v531_v37, inf  ;;  %v701_v33 = vsel %vm595_vm1, %v534_v38, inf  ;;  %v3176_v37 = vld [vmem:[%s2885_s10 + $0xe0] sm:$0xff]   ;;  %v3195_v38 = vld [vmem:[%s2885_s10 + $0xe8] sm:$0xff]  }
  0x72   : > { %2412 = vmatmul.mubr.msk.bf16.gmra.mrb[20].mxu1 %vm595_vm1, %v3173_v40 }
  0x73   : > { %2384 = vmatmul.mubr.msk.bf16.gmra.mrb[28].mxu0 %vm595_vm1, %v3121_v22  ;;  %2415 = vmatprep.mubr.msk.bf16.mxu1 %vm595_vm1, %v3176_v37  ;;  %v569_v22 = vunpack.c.l.bf16 %v3046_v30 }
  0x75   : > { %690 = vmax.xlane.f32.xlu1 %v689_v48  ;;  %687 = vmax.xlane.f32.xlu0 %v686_v61  ;;  %v707_v48 = vsel %vm595_vm1, %v536_v46, inf  ;;  %v704_v61 = vsel %vm595_vm1, %v535_v47, inf  ;;  %v719_v46 = vsel %vm595_vm1, %v540_v58, inf  ;;  %v716_v47 = vsel %vm595_vm1, %v539_v59, inf }
  0x76   : > { %v728_v58 = vsel %vm595_vm1, %v543_v5, inf  ;;  %v737_v59 = vsel %vm595_vm1, %v546_v9, inf  ;;  %v755_v5 = vsel %vm595_vm1, %v552_v28, inf  ;;  %v761_v9 = vsel %vm595_vm1, %v554_v42, inf }
  0x77   : > { %v782_v28 = vsel %vm595_vm1, %v561_v45, inf  ;;  %v855_v42 = vsel %vm595_vm1, %v564_v29, -inf  ;;  %v870_v45 = vsel %vm595_vm1, %v569_v22, -inf }
  0x79   : > { %696 = vmin.xlane.f32.xlu1 %v695_v13  ;;  %693 = vmin.xlane.f32.xlu0 %v692_v27  ;;  %v572_v13 = vunpack.c.h.bf16 %v3052_v32  ;;  %v571_v27 = vunpack.c.l.bf16 %v3052_v32 }
  0x7a   : > { %2416 = vmatmul.mubr.msk.bf16.gmra.mrb[24].mxu1 %vm595_vm1, %v3195_v38 }
  0x7b   : > { %2419 = vmatprep.mubr.msk.bf16.mxu1 %vm595_vm1, %v3198_v41 }
  0x7d   : > { %702 = vmin.xlane.f32.xlu1 %v701_v33  ;;  %699 = vmin.xlane.f32.xlu0 %v698_v35 }
  0x81   : > { %708 = vmin.xlane.f32.xlu1 %v707_v48  ;;  %705 = vmin.xlane.f32.xlu0 %v704_v61  ;;  %v879_v48 = vsel %vm595_vm1, %v572_v13, -inf  ;;  %v876_v61 = vsel %vm595_vm1, %v571_v27, -inf }
  0x82   : > { %2420 = vmatmul.mubr.msk.bf16.gmra.mrb[28].mxu1 %vm595_vm1, %v3217_v54 }
  0x85   : > { %714 = vmin.xlane.f32.xlu1 %v713_v34  ;;  %711 = vmin.xlane.f32.xlu0 %v710_v36  ;;  %v574_v34 = vunpack.c.h.bf16 %v3082_v52  ;;  %v573_v36 = vunpack.c.l.bf16 %v3082_v52 }
  0x87   : > { %v978_v32 = vsel %vm595_vm1, %v573_v36, inf }
  0x89   : > { %720 = vmin.xlane.f32.xlu1 %v719_v46  ;;  %717 = vmin.xlane.f32.xlu0 %v716_v47 }
  0x8d   : > { %726 = vmin.xlane.f32.xlu1 %v725_v49  ;;  %723 = vmin.xlane.f32.xlu0 %v722_v53  ;;  %v885_v49 = vsel %vm595_vm1, %v574_v34, -inf  ;;  %v882_v53 = vsel %vm595_vm1, %v573_v36, -inf }
  0x91   : > { %732 = vmin.xlane.f32.xlu1 %v731_v55  ;;  %729 = vmin.xlane.f32.xlu0 %v728_v58  ;;  %v576_v55 = vunpack.c.h.bf16 %v3088_v57  ;;  %v575_v58 = vunpack.c.l.bf16 %v3088_v57 }
  0x93   : > { %v987_v52 = vsel %vm595_vm1, %v576_v55, inf  ;;  %v984_v36 = vsel %vm595_vm1, %v575_v58, inf }
  0x95   : > { %738 = vmin.xlane.f32.xlu1 %v737_v59  ;;  %735 = vmin.xlane.f32.xlu0 %v734_v60 }
  0x99   : > { %744 = vmin.xlane.f32.xlu1 %v743_v63  ;;  %741 = vmin.xlane.f32.xlu0 %v740_v0  ;;  %v891_v63 = vsel %vm595_vm1, %v576_v55, -inf  ;;  %v888_v0 = vsel %vm595_vm1, %v575_v58, -inf  ;;  %v4402_v58 = vunpack.c.l.bf16 %v3118_v21 }
  0x9d   : > { %750 = vmin.xlane.f32.xlu1 %v749_v1  ;;  %747 = vmin.xlane.f32.xlu0 %v746_v4  ;;  %v578_v1 = vunpack.c.h.bf16 %v3118_v21  ;;  %v4379_v4 = vunpack.c.l.bf16 %v3118_v21 }
  0x9f   : > { %v993_v57 = vsel %vm595_vm1, %v578_v1, inf }
  0xa1   : > { %756 = vmin.xlane.f32.xlu1 %v755_v5  ;;  %753 = vmin.xlane.f32.xlu0 %v752_v6 }
  0xa5   : > { %762 = vmin.xlane.f32.xlu1 %v761_v9  ;;  %759 = vmin.xlane.f32.xlu0 %v758_v10  ;;  %v897_v9 = vsel %vm595_vm1, %v578_v1, -inf  ;;  %v894_v10 = vsel %vm595_vm1, %v4379_v4, -inf }
  0xa9   : > { %768 = vmin.xlane.f32.xlu1 %v767_v11  ;;  %765 = vmin.xlane.f32.xlu0 %v764_v12  ;;  %v4377_v11 = vunpack.c.h.bf16 %v3124_v26  ;;  %v4374_v12 = vunpack.c.l.bf16 %v3124_v26 }
  0xad   : > { %774 = vmin.xlane.f32.xlu1 %v773_v15  ;;  %771 = vmin.xlane.f32.xlu0 %v770_v19 }
  0xb1   : > { %780 = vmin.xlane.f32.xlu1 %v779_v23  ;;  %777 = vmin.xlane.f32.xlu0 %v776_v24  ;;  %v903_v23 = vsel %vm595_vm1, %v4377_v11, -inf  ;;  %v900_v24 = vsel %vm595_vm1, %v4374_v12, -inf }
  0xb5   : > { %786 = vmin.xlane.f32.xlu1 %v785_v25  ;;  %783 = vmin.xlane.f32.xlu0 %v782_v28  ;;  %v4373_v25 = vunpack.c.h.bf16 %v3149_v62  ;;  %v4370_v28 = vunpack.c.l.bf16 %v3149_v62 }
  0xb9   : > { %856 = vmax.xlane.f32.xlu1 %v855_v42  ;;  %853 = vmax.xlane.f32.xlu0 %v852_v43 }
  0xbd   : > { %862 = vmax.xlane.f32.xlu1 %v861_v51  ;;  %859 = vmax.xlane.f32.xlu0 %v858_v56  ;;  %v909_v51 = vsel %vm595_vm1, %v4373_v25, -inf  ;;  %v906_v56 = vsel %vm595_vm1, %v4370_v28, -inf  ;;  %v4380_v25 = vunpack.c.l.bf16 %v3217_v54 }
  0xc1   : > { %868 = vmax.xlane.f32.xlu1 %v867_v7  ;;  %865 = vmax.xlane.f32.xlu0 %v864_v14  ;;  %v4369_v7 = vunpack.c.h.bf16 %v3152_v8  ;;  %v4366_v14 = vunpack.c.l.bf16 %v3152_v8 }
  0xc5   : > { %874 = vmax.xlane.f32.xlu1 %v873_v39  ;;  %871 = vmax.xlane.f32.xlu0 %v870_v45 }
  0xc6   : > { %v3315_v33 = vpop.xlane.xlu1 %603  ;;  %v3317_v35 = vpop.xlane.xlu0 %597 }
  0xc9   : > { %880 = vmax.xlane.f32.xlu1 %v879_v48  ;;  %877 = vmax.xlane.f32.xlu0 %v876_v61  ;;  %v915_v48 = vsel %vm595_vm1, %v4369_v7, -inf  ;;  %v912_v61 = vsel %vm595_vm1, %v4366_v14, -inf  ;;  %v4376_v7 = vunpack.c.l.bf16 %v3198_v41 }
  0xca   : > { %v3327_v46 = vpop.xlane.xlu1 %606  ;;  %v3329_v47 = vpop.xlane.xlu0 %600 }
  0xcd   : > { %886 = vmax.xlane.f32.xlu1 %v885_v49  ;;  %883 = vmax.xlane.f32.xlu0 %v882_v53  ;;  %v4365_v49 = vunpack.c.h.bf16 %v3173_v40  ;;  %v4364_v53 = vunpack.c.l.bf16 %v3173_v40 }
  0xce   : > { %v3339_v59 = vpop.xlane.xlu1 %612  ;;  %v3341_v60 = vpop.xlane.xlu0 %609 }
  0xd1   : > { %892 = vmax.xlane.f32.xlu1 %v891_v63  ;;  %889 = vmax.xlane.f32.xlu0 %v888_v0 }
  0xd2   : > { %v3351_v5 = vpop.xlane.xlu1 %618  ;;  %v3353_v6 = vpop.xlane.xlu0 %615 }
  0xd5   : > { %898 = vmax.xlane.f32.xlu1 %v897_v9  ;;  %895 = vmax.xlane.f32.xlu0 %v894_v10  ;;  %v921_v9 = vsel %vm595_vm1, %v4365_v49, -inf  ;;  %v918_v10 = vsel %vm595_vm1, %v4364_v53, -inf  ;;  %v4371_v53 = vunpack.c.h.bf16 %v3195_v38  ;;  %v4372_v49 = vunpack.c.l.bf16 %v3195_v38 }
  0xd6   : > { %v3363_v15 = vpop.xlane.xlu1 %624  ;;  %v3365_v19 = vpop.xlane.xlu0 %621 }
  0xd7   : > { %v933_v14 = vsel %vm595_vm1, %v4371_v53, -inf  ;;  %v936_v53 = vsel %vm595_vm1, %v4376_v7, -inf }
  0xd9   : > { %904 = vmax.xlane.f32.xlu1 %v903_v23  ;;  %901 = vmax.xlane.f32.xlu0 %v900_v24  ;;  %v4367_v23 = vunpack.c.h.bf16 %v3176_v37  ;;  %v4368_v24 = vunpack.c.l.bf16 %v3176_v37 }
  0xda   : > { %v3375_v42 = vpop.xlane.xlu1 %630  ;;  %v3377_v43 = vpop.xlane.xlu0 %627 }
  0xdd   : > { %910 = vmax.xlane.f32.xlu1 %v909_v51  ;;  %907 = vmax.xlane.f32.xlu0 %v906_v56 }
  0xde   : > { %v3387_v39 = vpop.xlane.xlu1 %636  ;;  %v3389_v45 = vpop.xlane.xlu0 %633 }
  0xe1   : > { %916 = vmax.xlane.f32.xlu1 %v915_v48  ;;  %913 = vmax.xlane.f32.xlu0 %v912_v61  ;;  %v927_v48 = vsel %vm595_vm1, %v4367_v23, -inf  ;;  %v924_v61 = vsel %vm595_vm1, %v4368_v24, -inf  ;;  %v930_v23 = vsel %vm595_vm1, %v4372_v49, -inf  ;;  %v4375_v24 = vunpack.c.h.bf16 %v3198_v41 }
  0xe2   : > { %v3399_v63 = vpop.xlane.xlu1 %642  ;;  %v3401_v0 = vpop.xlane.xlu0 %639  ;;  %v4378_v49 = vunpack.c.h.bf16 %v3217_v54 }
  0xe3   : > { %v939_v28 = vsel %vm595_vm1, %v4375_v24, -inf  ;;  %v942_v24 = vsel %vm595_vm1, %v4380_v25, -inf }
  0xe4   : > { %v945_v12 = vsel %vm595_vm1, %v4378_v49, -inf }
  0xe5   : > { %922 = vmax.xlane.f32.xlu1 %v921_v9  ;;  %919 = vmax.xlane.f32.xlu0 %v918_v10 }
  0xe6   : > { %v3411_v51 = vpop.xlane.xlu1 %648  ;;  %v3413_v56 = vpop.xlane.xlu0 %645 }
  0xe9   : > { %928 = vmax.xlane.f32.xlu1 %v927_v48  ;;  %925 = vmax.xlane.f32.xlu0 %v924_v61 }
  0xea   : > { %v3423_v9 = vpop.xlane.xlu1 %654  ;;  %v3425_v10 = vpop.xlane.xlu0 %651 }
  0xed   : > { %934 = vmax.xlane.f32.xlu1 %v933_v14  ;;  %931 = vmax.xlane.f32.xlu0 %v930_v23 }
  0xee   : > { %v3435_v48 = vpop.xlane.xlu1 %660  ;;  %v3437_v61 = vpop.xlane.xlu0 %657 }
  0xf1   : > { %940 = vmax.xlane.f32.xlu1 %v939_v28  ;;  %937 = vmax.xlane.f32.xlu0 %v936_v53  ;;  %v951_v28 = vsel %vm595_vm1, %v564_v29, inf  ;;  %v948_v53 = vsel %vm595_vm1, %v563_v31, inf  ;;  %v963_v31 = vsel %vm595_vm1, %v568_v2, inf }
  0xf2   : > { %v3447_v14 = vpop.xlane.xlu1 %666  ;;  %v3449_v23 = vpop.xlane.xlu0 %663 }
  0xf5   : > { %946 = vmax.xlane.f32.xlu1 %v945_v12  ;;  %943 = vmax.xlane.f32.xlu0 %v942_v24  ;;  %v957_v12 = vsel %vm595_vm1, %v566_v44, inf  ;;  %v954_v24 = vsel %vm595_vm1, %v565_v50, inf  ;;  %v969_v50 = vsel %vm595_vm1, %v570_v17, inf }
  0xf6   : > { %v3457_v7 = vpop.xlane.xlu1 %672  ;;  %v3459_v11 = vpop.xlane.xlu0 %669 }
  0xf9   : > { %952 = vmin.xlane.f32.xlu1 %v951_v28  ;;  %949 = vmin.xlane.f32.xlu0 %v948_v53  ;;  %v960_v28 = vsel %vm595_vm1, %v567_v3, inf  ;;  %v966_v53 = vsel %vm595_vm1, %v569_v22, inf  ;;  %v975_v3 = vsel %vm595_vm1, %v572_v13, inf  ;;  %v981_v13 = vsel %vm595_vm1, %v574_v34, inf }
  0xfa   : > { %v3467_v49 = vpop.xlane.xlu1 %678  ;;  %v3469_v4 = vpop.xlane.xlu0 %675 }
  0xfd   : > { %958 = vmin.xlane.f32.xlu1 %v957_v12  ;;  %955 = vmin.xlane.f32.xlu0 %v954_v24  ;;  %v972_v12 = vsel %vm595_vm1, %v571_v27, inf }
  0xfe   : > { %v3477_v29 = vpop.xlane.xlu1 %684  ;;  %v3479_v16 = vpop.xlane.xlu0 %681 }
 0x101   : > { %964 = vmin.xlane.f32.xlu1 %v963_v31  ;;  %961 = vmin.xlane.f32.xlu0 %v960_v28 }
 0x102   : > { %v3487_v44 = vpop.xlane.xlu1 %690  ;;  %v3489_v18 = vpop.xlane.xlu0 %687 }
 0x105   : > { %970 = vmin.xlane.f32.xlu1 %v969_v50  ;;  %967 = vmin.xlane.f32.xlu0 %v966_v53 }
 0x106   : > { %v697_v2 = vpop.xlane.xlu1 %696  ;;  %v694_v20 = vpop.xlane.xlu0 %693 }
 0x107   : > { %v789_v24 = vsub.f32 %v3329_v47, %v697_v2  ;;  %v788_v17 = vsub.f32 %v3317_v35, %v694_v20 }
 0x109   : > { %v3505_v31 = vadd.f32 1e-06, %v789_v24  ;;  %v3507_v30 = vadd.f32 1e-06, %v788_v17  ;;  %976 = vmin.xlane.f32.xlu1 %v975_v3  ;;  %973 = vmin.xlane.f32.xlu0 %v972_v12 }
 0x10a   : > { %v703_v22 = vpop.xlane.xlu1 %702  ;;  %v700_v28 = vpop.xlane.xlu0 %699 }
 0x10b   : > { %2534 = vrcp.f32 %v3505_v31  ;;  %v791_v27 = vsub.f32 %v3327_v46, %v703_v22  ;;  %v790_v35 = vsub.f32 %v3315_v33, %v700_v28 }
 0x10c   : > { %2536 = vrcp.f32 %v3507_v30 }
 0x10d   : > { %v3519_v47 = vadd.f32 1e-06, %v791_v27  ;;  %v3521_v50 = vadd.f32 1e-06, %v790_v35  ;;  %982 = vmin.xlane.f32.xlu1 %v981_v13  ;;  %979 = vmin.xlane.f32.xlu0 %v978_v32 }
 0x10e   : > { %v709_v53 = vpop.xlane.xlu1 %708  ;;  %v706_v34 = vpop.xlane.xlu0 %705 }
 0x10f   : > { %2538 = vrcp.f32 %v3519_v47  ;;  %v793_v33 = vsub.f32 %v3339_v59, %v709_v53  ;;  %v792_v46 = vsub.f32 %v3341_v60, %v706_v34  ;;  %v2357_v3 = vpop.f32.mrb[0].mxu0  ;;  %v990_v59 = vsel %vm595_vm1, %v4402_v58, inf }
 0x110   : > { %2540 = vrcp.f32 %v3521_v50  ;;  %v1350_v17 = vpop.f32.mrb[1].mxu0  ;;  %v4404_v34 = vunpack.c.l.bf16 %v3124_v26 }
 0x111   : > { %v3533_v2 = vadd.f32 1e-06, %v793_v33  ;;  %v3535_v20 = vadd.f32 1e-06, %v792_v46  ;;  %988 = vmin.xlane.f32.xlu1 %v987_v52  ;;  %985 = vmin.xlane.f32.xlu0 %v984_v36  ;;  %v2358_v22 = vpop.f32.mrb[2].mxu0 }
 0x112   : > { %v715_v55 = vpop.xlane.xlu1 %714  ;;  %v712_v12 = vpop.xlane.xlu0 %711  ;;  %v996_v52 = vsel %vm595_vm1, %v4404_v34, inf }
 0x113   : > { %2542 = vrcp.f32 %v3533_v2  ;;  %v795_v60 = vsub.f32 %v3351_v5, %v715_v55  ;;  %v794_v24 = vsub.f32 %v3353_v6, %v712_v12  ;;  %v1353_v1 = vpop.f32.mrb[3].mxu0  ;;  %v4403_v5 = vunpack.c.h.bf16 %v3124_v26 }
 0x114   : > { %2544 = vrcp.f32 %v3535_v20 }
 0x115   : > { %v2535_v28 = vpop.eup %2534  ;;  %v3547_v13 = vadd.f32 1e-06, %v795_v60  ;;  %v3549_v32 = vadd.f32 1e-06, %v794_v24  ;;  %994 = vmin.xlane.f32.xlu1 %v993_v57  ;;  %991 = vmin.xlane.f32.xlu0 %v990_v59  ;;  %v999_v6 = vsel %vm595_vm1, %v4403_v5, inf }
 0x116   : > { %v2537_v21 = vpop.eup %2536  ;;  %v3551_v27 = vmul.f32 %v2535_v28, %v1353_v1  ;;  %v721_v35 = vpop.xlane.xlu1 %720 }
 0x117   : > { %v718_v53 = vpop.xlane.xlu0 %717  ;;  %2546 = vrcp.f32 %v3547_v13  ;;  %v3560_v36 = vmul.f32 %v2537_v21, %v1350_v17  ;;  %v797_v33 = vsub.f32 %v3363_v15, %v721_v35  ;;  %v2361_v26 = vpop.f32.mrb[4].mxu0  ;;  %v4405_v17 = vunpack.c.h.bf16 %v3149_v62 }
 0x118   : > { %v796_v46 = vsub.f32 %v3365_v19, %v718_v53  ;;  %2548 = vrcp.f32 %v3549_v32  ;;  %v4406_v19 = vunpack.c.l.bf16 %v3149_v62 }
 0x119   : > { %v2539_v55 = vpop.eup %2538  ;;  %v3565_v12 = vadd.f32 1e-06, %v797_v33  ;;  %1000 = vmin.xlane.f32.xlu1 %v999_v6  ;;  %997 = vmin.xlane.f32.xlu0 %v996_v52  ;;  %v1005_v15 = vsel %vm595_vm1, %v4405_v17, inf }
 0x11a   : > { %v3567_v57 = vadd.f32 1e-06, %v796_v46  ;;  %v2541_v58 = vpop.eup %2540  ;;  %v3569_v59 = vmul.f32 %v2539_v55, %v2358_v22  ;;  %v727_v60 = vpop.xlane.xlu1 %726  ;;  %v1002_v28 = vsel %vm595_vm1, %v4406_v19, inf  ;;  %v4408_v55 = vunpack.c.l.bf16 %v3152_v8 }
 0x11b   : > { %v724_v24 = vpop.xlane.xlu0 %723  ;;  %v3577_v1 = vmul.f32 %v2541_v58, %v2357_v3  ;;  %2550 = vrcp.f32 %v3565_v12  ;;  %v799_v21 = vsub.f32 %v3375_v42, %v727_v60  ;;  %v1366_v22 = vpop.f32.mrb[5].mxu0  ;;  %v4407_v42 = vunpack.c.h.bf16 %v3152_v8 }
 0x11c   : > { %v798_v35 = vsub.f32 %v3377_v43, %v724_v24  ;;  %2552 = vrcp.f32 %v3567_v57  ;;  %v2362_v53 = vpop.f32.mrb[6].mxu0  ;;  %v1008_v58 = vsel %vm595_vm1, %v4408_v55, inf }
 0x11d   : > { %v2543_v5 = vpop.eup %2542  ;;  %v3583_v6 = vadd.f32 1e-06, %v799_v21  ;;  %1006 = vmin.xlane.f32.xlu1 %v1005_v15  ;;  %v1369_v62 = vpop.f32.mrb[7].mxu0  ;;  %1003 = vmin.xlane.f32.xlu0 %v1002_v28  ;;  %v1011_v43 = vsel %vm595_vm1, %v4407_v42, inf }
 0x11e   : > { %v3585_v34 = vadd.f32 1e-06, %v798_v35  ;;  %v2545_v3 = vpop.eup %2544  ;;  %v3587_v52 = vmul.f32 %v2543_v5, %v1369_v62  ;;  %v733_v33 = vpop.xlane.xlu1 %732  ;;  %v4411_v62 = vunpack.c.h.bf16 %v3173_v40 }
 0x11f   : > { %v730_v46 = vpop.xlane.xlu0 %729  ;;  %2554 = vrcp.f32 %v3583_v6  ;;  %v3596_v60 = vmul.f32 %v2545_v3, %v1366_v22  ;;  %v801_v24 = vsub.f32 %v3387_v39, %v733_v33  ;;  %v2365_v8 = vpop.f32.mrb[8].mxu0 }
 0x120   : > { %v800_v17 = vsub.f32 %v3389_v45, %v730_v46  ;;  %2556 = vrcp.f32 %v3585_v34  ;;  %v1017_v39 = vsel %vm595_vm1, %v4411_v62, inf  ;;  %v4412_v45 = vunpack.c.l.bf16 %v3173_v40 }
 0x121   : > { %v2547_v15 = vpop.eup %2546  ;;  %v3601_v19 = vadd.f32 1e-06, %v801_v24  ;;  %1012 = vmin.xlane.f32.xlu1 %v1011_v43  ;;  %1009 = vmin.xlane.f32.xlu0 %v1008_v58 }
 0x122   : > { %v3603_v28 = vadd.f32 1e-06, %v800_v17  ;;  %v2549_v21 = vpop.eup %2548  ;;  %v3605_v35 = vmul.f32 %v2547_v15, %v2362_v53  ;;  %v739_v5 = vpop.xlane.xlu1 %738  ;;  %v1014_v3 = vsel %vm595_vm1, %v4412_v45, inf }
 0x123   : > { %4409 = vst [vmem:[#allocation6_spill] sm:$0xff] %v3601_v19  ;;  %v736_v22 = vpop.xlane.xlu0 %735  ;;  %v3613_v33 = vmul.f32 %v2549_v21, %v2361_v26  ;;  %2558 = vrcp.f32 %v3601_v19  ;;  %v803_v46 = vsub.f32 %v3399_v63, %v739_v5  ;;  %v1382_v53 = vpop.f32.mrb[9].mxu0  ;;  %v4415_v63 = vunpack.c.h.bf16 %v3176_v37 }
 0x124   : > { %4410 = vst [vmem:[#allocation7_spill] sm:$0xff] %v3603_v28  ;;  %v802_v42 = vsub.f32 %v3401_v0, %v736_v22  ;;  %2560 = vrcp.f32 %v3603_v28  ;;  %v2366_v43 = vpop.f32.mrb[10].mxu0  ;;  %v4416_v5 = vunpack.c.l.bf16 %v3176_v37 }
 0x125   : > { %v2551_v55 = vpop.eup %2550  ;;  %v3619_v58 = vadd.f32 1e-06, %v803_v46  ;;  %1018 = vmin.xlane.f32.xlu1 %v1017_v39  ;;  %v1385_v40 = vpop.f32.mrb[11].mxu0  ;;  %1015 = vmin.xlane.f32.xlu0 %v1014_v3  ;;  %v1023_v0 = vsel %vm595_vm1, %v4415_v63, inf }
 0x126   : > { %v3621_v24 = vadd.f32 1e-06, %v802_v42  ;;  %v2553_v26 = vpop.eup %2552  ;;  %v3623_v17 = vmul.f32 %v2551_v55, %v1385_v40  ;;  %v745_v15 = vpop.xlane.xlu1 %744  ;;  %v1020_v22 = vsel %vm595_vm1, %v4416_v5, inf }
 0x127   : > { %v742_v21 = vpop.xlane.xlu0 %741  ;;  %2562 = vrcp.f32 %v3619_v58  ;;  %v3632_v62 = vmul.f32 %v2553_v26, %v1382_v53  ;;  %v805_v39 = vsub.f32 %v3411_v51, %v745_v15  ;;  %v2369_v37 = vpop.f32.mrb[12].mxu0  ;;  %v4419_v26 = vunpack.c.h.bf16 %v3195_v38 }
 0x128   : > { %4413 = vst [vmem:[#allocation8_spill] sm:$0xff] %v3621_v24  ;;  %4414 = vst [vmem:[#allocation9_spill] sm:$0xff] %v3623_v17  ;;  %v804_v45 = vsub.f32 %v3413_v56, %v742_v21  ;;  %2564 = vrcp.f32 %v3621_v24  ;;  %v4420_v56 = vunpack.c.l.bf16 %v3195_v38 }
 0x129   : > { %v2555_v3 = vpop.eup %2554  ;;  %v3637_v46 = vadd.f32 1e-06, %v805_v39  ;;  %1024 = vmin.xlane.f32.xlu1 %v1023_v0  ;;  %1021 = vmin.xlane.f32.xlu0 %v1020_v22  ;;  %v1029_v51 = vsel %vm595_vm1, %v4419_v26, inf  ;;  %v3654_v22 = vpop.f32.mrb[0].mxu1 }
 0x12a   : > { %v3639_v42 = vadd.f32 1e-06, %v804_v45  ;;  %v2557_v55 = vpop.eup %2556  ;;  %v3641_v40 = vmul.f32 %v2555_v3, %v2366_v43  ;;  %v751_v63 = vpop.xlane.xlu1 %750  ;;  %v1026_v15 = vsel %vm595_vm1, %v4420_v56, inf  ;;  %v4425_v56 = vunpack.c.h.bf16 %v3198_v41 }
 0x12b   : > { %4417 = vst [vmem:[#allocation10_spill] sm:$0xff] %v3637_v46  ;;  %v748_v53 = vpop.xlane.xlu0 %747  ;;  %v3649_v21 = vmul.f32 %v2557_v55, %v2365_v8  ;;  %2566 = vrcp.f32 %v3637_v46  ;;  %v807_v0 = vsub.f32 %v3423_v9, %v751_v63  ;;  %v1398_v43 = vpop.f32.mrb[13].mxu0 }
 0x12c   : > { %4418 = vst [vmem:[#allocation11_spill] sm:$0xff] %v3639_v42  ;;  %v806_v5 = vsub.f32 %v3425_v10, %v748_v53  ;;  %2568 = vrcp.f32 %v3639_v42  ;;  %v2370_v39 = vpop.f32.mrb[14].mxu0  ;;  %v3657_v45 = vpop.f32.mrb[1].mxu1  ;;  %v1035_v25 = vsel %vm595_vm1, %v4425_v56, inf  ;;  %v4426_v42 = vunpack.c.l.bf16 %v3198_v41 }
 0x12d   : > { %4421 = vst [vmem:[#allocation12_spill] sm:$0xff] %v3649_v21  ;;  %v2559_v3 = vpop.eup %2558  ;;  %v3659_v38 = vadd.f32 1e-06, %v807_v0  ;;  %1030 = vmin.xlane.f32.xlu1 %v1029_v51  ;;  %v1401_v8 = vpop.f32.mrb[15].mxu0  ;;  %1027 = vmin.xlane.f32.xlu0 %v1026_v15 }
 0x12e   : > { %v3661_v26 = vadd.f32 1e-06, %v806_v5  ;;  %v3663_v55 = vpop.f32.mrb[2].mxu1  ;;  %v2561_v9 = vpop.eup %2560  ;;  %v3665_v10 = vmul.f32 %v2559_v3, %v1401_v8  ;;  %v1032_v0 = vsel %vm595_vm1, %v4426_v42, inf }
 0x12f   : > { %4422 = vst [vmem:[#allocation13_spill] sm:$0xff] %v3659_v38  ;;  %v757_v63 = vpop.xlane.xlu1 %756  ;;  %v754_v53 = vpop.xlane.xlu0 %753  ;;  %2570 = vrcp.f32 %v3659_v38  ;;  %v3674_v51 = vmul.f32 %v2561_v9, %v1398_v43 }
 0x130   : > { %4423 = vst [vmem:[#allocation14_spill] sm:$0xff] %v3661_v26  ;;  %4424 = vst [vmem:[#allocation15_spill] sm:$0xff] %v3665_v10  ;;  %v809_v15 = vsub.f32 %v3435_v48, %v757_v63  ;;  %v808_v5 = vsub.f32 %v3437_v61, %v754_v53  ;;  %v3678_v3 = vpop.f32.mrb[3].mxu1  ;;  %2572 = vrcp.f32 %v3661_v26  ;;  %v2373_v41 = vpop.f32.mrb[16].mxu0  ;;  %v4431_v48 = vunpack.c.h.bf16 %v3217_v54 }
 0x131   : > { %4427 = vst [vmem:[#allocation16_spill] sm:$0xff] %v3674_v51  ;;  %v2563_v8 = vpop.eup %2562  ;;  %1036 = vmin.xlane.f32.xlu1 %v1035_v25  ;;  %1033 = vmin.xlane.f32.xlu0 %v1032_v0  ;;  %v4432_v63 = vunpack.c.l.bf16 %v3217_v54 }
 0x132   : > { %v3681_v46 = vadd.f32 1e-06, %v809_v15  ;;  %v3683_v56 = vadd.f32 1e-06, %v808_v5  ;;  %v2565_v42 = vpop.eup %2564  ;;  %v3685_v38 = vmul.f32 %v2563_v8, %v2370_v39  ;;  %v1041_v61 = vsel %vm595_vm1, %v4431_v48, inf  ;;  %v1414_v39 = vpop.f32.mrb[17].mxu0 }
 0x133   : > { %v763_v43 = vpop.xlane.xlu1 %762  ;;  %v760_v9 = vpop.xlane.xlu0 %759  ;;  %v1038_v53 = vsel %vm595_vm1, %v4432_v63, inf  ;;  %v3693_v15 = vmul.f32 %v2565_v42, %v2369_v37 }
 0x134   : > { %4428 = vst [vmem:[#allocation17_spill] sm:$0xff] %v3681_v46  ;;  %4429 = vst [vmem:[#allocation18_spill] sm:$0xff] %v3683_v56  ;;  %2574 = vrcp.f32 %v3681_v46  ;;  %v811_v25 = vsub.f32 %v3447_v14, %v763_v43  ;;  %v810_v0 = vsub.f32 %v3449_v23, %v760_v9  ;;  %v3698_v5 = vpop.f32.mrb[4].mxu1  ;;  %v2374_v8 = vpop.f32.mrb[18].mxu0 }
 0x135   : > { %4430 = vst [vmem:[#allocation19_spill] sm:$0xff] %v3685_v38  ;;  %4433 = vst [vmem:[#allocation20_spill] sm:$0xff] %v3693_v15  ;;  %2576 = vrcp.f32 %v3683_v56  ;;  %v3701_v26 = vpop.f32.mrb[5].mxu1  ;;  %v2567_v48 = vpop.eup %2566  ;;  %1042 = vmin.xlane.f32.xlu1 %v1041_v61  ;;  %1039 = vmin.xlane.f32.xlu0 %v1038_v53 }
 0x136   : > { %v3703_v54 = vadd.f32 1e-06, %v811_v25  ;;  %v3705_v63 = vadd.f32 1e-06, %v810_v0  ;;  %v1417_v37 = vpop.f32.mrb[19].mxu0  ;;  %v3707_v42 = vpop.f32.mrb[6].mxu1 }
 0x137   : > { %v2569_v14 = vpop.eup %2568  ;;  %v3709_v23 = vmul.f32 %v2567_v48, %v1417_v37  ;;  %v769_v43 = vpop.xlane.xlu1 %768 }
 0x138   : > { %4434 = vst [vmem:[#allocation21_spill] sm:$0xff] %v3703_v54  ;;  %4435 = vst [vmem:[#allocation22_spill] sm:$0xff] %v3705_v63  ;;  %v766_v9 = vpop.xlane.xlu0 %765  ;;  %2578 = vrcp.f32 %v3703_v54  ;;  %v3712_v56 = vmul.f32 %v2569_v14, %v1414_v39  ;;  %v813_v46 = vsub.f32 %v3457_v7, %v769_v43  ;;  %v3716_v0 = vpop.f32.mrb[7].mxu1 }
 0x139   : > { %4436 = vst [vmem:[#allocation23_spill] sm:$0xff] %v3709_v23  ;;  %v812_v25 = vsub.f32 %v3459_v11, %v766_v9  ;;  %2580 = vrcp.f32 %v3705_v63  ;;  %v2571_v61 = vpop.eup %2570  ;;  %v2377_v48 = vpop.f32.mrb[20].mxu0 }
 0x13a   : > { %4437 = vst [vmem:[#allocation24_spill] sm:$0xff] %v3712_v56  ;;  %v3719_v53 = vadd.f32 1e-06, %v813_v46  ;;  %v2573_v37 = vpop.eup %2572  ;;  %v3723_v23 = vmul.f32 %v2571_v61, %v2374_v8  ;;  %v1430_v43 = vpop.f32.mrb[21].mxu0 }
 0x13b   : > { %v3721_v24 = vadd.f32 1e-06, %v812_v25  ;;  %v775_v54 = vpop.xlane.xlu1 %774  ;;  %v3725_v14 = vmul.f32 %v2573_v37, %v2373_v41  ;;  %v3730_v9 = vpop.f32.mrb[8].mxu1 }
 0x13c   : > { %4438 = vst [vmem:[#allocation25_spill] sm:$0xff] %v3719_v53  ;;  %4440 = vst [vmem:[#allocation27_spill] sm:$0xff] %v3723_v23  ;;  %v772_v39 = vpop.xlane.xlu0 %771  ;;  %2582 = vrcp.f32 %v3719_v53  ;;  %v815_v11 = vsub.f32 %v3467_v49, %v775_v54  ;;  %v2378_v46 = vpop.f32.mrb[22].mxu0 }
 0x13d   : > { %4439 = vst [vmem:[#allocation26_spill] sm:$0xff] %v3721_v24  ;;  %4441 = vst [vmem:[#allocation28_spill] sm:$0xff] %v3725_v14  ;;  %v814_v7 = vsub.f32 %v3469_v4, %v772_v39  ;;  %2584 = vrcp.f32 %v3721_v24  ;;  %v3733_v25 = vpop.f32.mrb[9].mxu1  ;;  %v1433_v41 = vpop.f32.mrb[23].mxu0 }
 0x13e   : > { %v2575_v8 = vpop.eup %2574  ;;  %v3735_v61 = vadd.f32 1e-06, %v815_v11  ;;  %v3739_v37 = vpop.f32.mrb[10].mxu1 }
 0x13f   : > { %v3737_v63 = vadd.f32 1e-06, %v814_v7  ;;  %v2577_v53 = vpop.eup %2576  ;;  %v3741_v49 = vmul.f32 %v2575_v8, %v1433_v41  ;;  %v781_v4 = vpop.xlane.xlu1 %780 }
 0x140   : > { %4442 = vst [vmem:[#allocation29_spill] sm:$0xff] %v3735_v61  ;;  %v778_v54 = vpop.xlane.xlu0 %777  ;;  %2586 = vrcp.f32 %v3735_v61  ;;  %v3744_v39 = vmul.f32 %v2577_v53, %v1430_v43  ;;  %v817_v24 = vsub.f32 %v3477_v29, %v781_v4  ;;  %v3748_v11 = vpop.f32.mrb[11].mxu1 }
 0x141   : > { %4443 = vst [vmem:[#allocation30_spill] sm:$0xff] %v3737_v63  ;;  %4444 = vst [vmem:[#allocation31_spill] sm:$0xff] %v3741_v49  ;;  %v816_v14 = vsub.f32 %v3479_v16, %v778_v54  ;;  %2588 = vrcp.f32 %v3737_v63  ;;  %v2381_v8 = vpop.f32.mrb[24].mxu0  ;;  %v3762_v54 = vpop.f32.mrb[12].mxu1 }
 0x142   : > { %4445 = vst [vmem:[#allocation32_spill] sm:$0xff] %v3744_v39  ;;  %v2579_v7 = vpop.eup %2578  ;;  %v3751_v23 = vadd.f32 1e-06, %v817_v24  ;;  %v1446_v4 = vpop.f32.mrb[25].mxu0  ;;  %4450 = vst [vmem:[#allocation37_spill] sm:$0xff] %v3762_v54 }
 0x143   : > { %v3753_v56 = vadd.f32 1e-06, %v816_v14  ;;  %v2581_v41 = vpop.eup %2580  ;;  %v3755_v49 = vmul.f32 %v2579_v7, %v2378_v46  ;;  %v787_v61 = vpop.xlane.xlu1 %786 }
 0x144   : > { %4446 = vst [vmem:[#allocation33_spill] sm:$0xff] %v3751_v23  ;;  %v784_v53 = vpop.xlane.xlu0 %783  ;;  %v3757_v43 = vmul.f32 %v2581_v41, %v2377_v48  ;;  %2590 = vrcp.f32 %v3751_v23  ;;  %v819_v29 = vsub.f32 %v3487_v44, %v787_v61  ;;  %v2382_v24 = vpop.f32.mrb[26].mxu0 }
 0x145   : > { %4447 = vst [vmem:[#allocation34_spill] sm:$0xff] %v3753_v56  ;;  %4448 = vst [vmem:[#allocation35_spill] sm:$0xff] %v3755_v49  ;;  %v818_v16 = vsub.f32 %v3489_v18, %v784_v53  ;;  %2592 = vrcp.f32 %v3753_v56  ;;  %v3765_v14 = vpop.f32.mrb[13].mxu1  ;;  %v1449_v48 = vpop.f32.mrb[27].mxu0 }
 0x146   : > { %4449 = vst [vmem:[#allocation36_spill] sm:$0xff] %v3757_v43  ;;  %4451 = vst [vmem:[#allocation38_spill] sm:$0xff] %v3765_v14  ;;  %v2583_v46 = vpop.eup %2582  ;;  %v3767_v7 = vadd.f32 1e-06, %v819_v29  ;;  %v3771_v41 = vpop.f32.mrb[14].mxu1 }
 0x147   : > { %v3769_v63 = vadd.f32 1e-06, %v818_v16  ;;  %4454 = vst [vmem:[#allocation41_spill] sm:$0xff] %v3771_v41  ;;  %v2585_v23 = vpop.eup %2584  ;;  %v3773_v44 = vmul.f32 %v2583_v46, %v1449_v48  ;;  %v3775_v18 = vpop.xlane.xlu1 %856 }
 0x148   : > { %4452 = vst [vmem:[#allocation39_spill] sm:$0xff] %v3767_v7  ;;  %v3777_v61 = vpop.xlane.xlu0 %853  ;;  %2594 = vrcp.f32 %v3767_v7  ;;  %v3780_v53 = vmul.f32 %v2585_v23, %v1446_v4  ;;  %v3782_v56 = vpop.f32.mrb[15].mxu1 }
 0x149   : > { %4453 = vst [vmem:[#allocation40_spill] sm:$0xff] %v3769_v63  ;;  %4455 = vst [vmem:[#allocation42_spill] sm:$0xff] %v3773_v44  ;;  %2596 = vrcp.f32 %v3769_v63  ;;  %v2385_v16 = vpop.f32.mrb[28].mxu0  ;;  %v3793_v15 = vpop.f32.mrb[16].mxu1 }
 0x14a   : > { %4456 = vst [vmem:[#allocation43_spill] sm:$0xff] %v3780_v53  ;;  %4457 = vst [vmem:[#allocation44_spill] sm:$0xff] %v3782_v56  ;;  %v2587_v29 = vpop.eup %2586  ;;  %v1462_v44 = vpop.f32.mrb[29].mxu0 }
 0x14b   : > { %v2589_v43 = vpop.eup %2588  ;;  %v3785_v49 = vmul.f32 %v2587_v29, %v2382_v24  ;;  %v3787_v39 = vpop.xlane.xlu1 %862  ;;  %4460 = vst [vmem:[#allocation47_spill] sm:$0xff] %v3793_v15 }
 0x14c   : > { %v3789_v46 = vpop.xlane.xlu0 %859  ;;  %v3791_v48 = vmul.f32 %v2589_v43, %v2381_v8  ;;  %v2386_v23 = vpop.f32.mrb[30].mxu0 }
 0x14d   : > { %4458 = vst [vmem:[#allocation45_spill] sm:$0xff] %v3785_v49  ;;  %v3795_v4 = vpop.f32.mrb[17].mxu1  ;;  %v1465_v53 = vpop.f32.mrb[31].mxu0 }
 0x14e   : > { %4459 = vst [vmem:[#allocation46_spill] sm:$0xff] %v3791_v48  ;;  %4461 = vst [vmem:[#allocation48_spill] sm:$0xff] %v3795_v4  ;;  %v2591_v7 = vpop.eup %2590  ;;  %v3797_v63 = vpop.f32.mrb[18].mxu1 }
 0x14f   : > { %4462 = vst [vmem:[#allocation49_spill] sm:$0xff] %v3797_v63  ;;  %v2593_v28 = vpop.eup %2592  ;;  %v3799_v10 = vmul.f32 %v2591_v7, %v1465_v53  ;;  %v3801_v24 = vpop.xlane.xlu1 %868 }
 0x150   : > { %v3803_v29 = vpop.xlane.xlu0 %865  ;;  %v3805_v49 = vmul.f32 %v2593_v28, %v1462_v44  ;;  %v3807_v8 = vpop.f32.mrb[19].mxu1 }
 0x151   : > { %4463 = vst [vmem:[#allocation50_spill] sm:$0xff] %v3799_v10  ;;  %4465 = vst [vmem:[#allocation52_spill] sm:$0xff] %v3807_v8  ;;  %v3817_v7 = vpop.f32.mrb[20].mxu1 }
 0x152   : > { %4464 = vst [vmem:[#allocation51_spill] sm:$0xff] %v3805_v49  ;;  %v2595_v43 = vpop.eup %2594  ;;  %4468 = vst [vmem:[#allocation55_spill] sm:$0xff] %v3817_v7  ;;  %v3819_v53 = vpop.f32.mrb[21].mxu1 }
 0x153   : > { %v2597_v48 = vpop.eup %2596  ;;  %v3809_v15 = vmul.f32 %v2595_v43, %v2386_v23  ;;  %v3811_v4 = vpop.xlane.xlu1 %874  ;;  %4469 = vst [vmem:[#allocation56_spill] sm:$0xff] %v3819_v53 }
 0x154   : > { %v3813_v38 = vpop.xlane.xlu0 %871  ;;  %v3815_v63 = vmul.f32 %v2597_v48, %v2385_v16  ;;  %v3821_v10 = vpop.f32.mrb[22].mxu1 }
 0x155   : > { %4466 = vst [vmem:[#allocation53_spill] sm:$0xff] %v3809_v15  ;;  %4470 = vst [vmem:[#allocation57_spill] sm:$0xff] %v3821_v10  ;;  %v3827_v49 = vpop.f32.mrb[23].mxu1 }
 0x156   : > { %4467 = vst [vmem:[#allocation54_spill] sm:$0xff] %v3815_v63  ;;  %4471 = vst [vmem:[#allocation58_spill] sm:$0xff] %v3827_v49  ;;  %v3833_v15 = vpop.f32.mrb[24].mxu1 }
 0x157   : > { %v3823_v28 = vpop.xlane.xlu1 %880  ;;  %4472 = vst [vmem:[#allocation59_spill] sm:$0xff] %v3833_v15  ;;  %v3835_v16 = vpop.f32.mrb[25].mxu1 }
 0x158   : > { %v3825_v44 = vpop.xlane.xlu0 %877  ;;  %4473 = vst [vmem:[#allocation60_spill] sm:$0xff] %v3835_v16  ;;  %v3837_v48 = vpop.f32.mrb[26].mxu1 }
 0x159   : > { %4474 = vst [vmem:[#allocation61_spill] sm:$0xff] %v3837_v48  ;;  %v3843_v10 = vpop.f32.mrb[27].mxu1 }
 0x15a   : > { %4475 = vst [vmem:[#allocation62_spill] sm:$0xff] %v3843_v10  ;;  %v3849_v49 = vpop.f32.mrb[28].mxu1 }
 0x15b   : > { %v3829_v23 = vpop.xlane.xlu1 %886  ;;  %4476 = vst [vmem:[#allocation63_spill] sm:$0xff] %v3849_v49  ;;  %v3851_v54 = vpop.f32.mrb[29].mxu1 }
 0x15c   : > { %v3831_v43 = vpop.xlane.xlu0 %883  ;;  %4477 = vst [vmem:[#allocation64_spill] sm:$0xff] %v3851_v54  ;;  %v3853_v51 = vpop.f32.mrb[30].mxu1 }
 0x15d   : > { %4478 = vst [vmem:[#allocation65_spill] sm:$0xff] %v3853_v51  ;;  %v3859_v48 = vpop.f32.mrb[31].mxu1 }
 0x15e   : > { %4481 = vst [vmem:[#allocation68_spill] sm:$0xff] %v3859_v48 }
 0x15f   : > { %v3839_v63 = vpop.xlane.xlu1 %892 }
 0x160   : > { %v3841_v7 = vpop.xlane.xlu0 %889 }
 0x163   : > { %v3845_v53 = vpop.xlane.xlu1 %898 }
 0x164   : > { %v3847_v8 = vpop.xlane.xlu0 %895 }
 0x167   : > { %v3855_v15 = vpop.xlane.xlu1 %904 }
 0x168   : > { %4479 = vst [vmem:[#allocation66_spill] sm:$0xff] %v3855_v15  ;;  %v3857_v16 = vpop.xlane.xlu0 %901 }
 0x169   : > { %4480 = vst [vmem:[#allocation67_spill] sm:$0xff] %v3857_v16 }
 0x16b   : > { %v3861_v19 = vpop.xlane.xlu1 %910 }
 0x16c   : > { %4482 = vst [vmem:[#allocation69_spill] sm:$0xff] %v3861_v19  ;;  %v3863_v56 = vpop.xlane.xlu0 %907 }
 0x16d   : > { %4483 = vst [vmem:[#allocation70_spill] sm:$0xff] %v3863_v56  ;;  %v2013_v56 = vlaneseq }
 0x16f   : > { %v3865_v10 = vpop.xlane.xlu1 %916 }
 0x170   : > { %4484 = vst [vmem:[#allocation71_spill] sm:$0xff] %v3865_v10  ;;  %v3867_v41 = vpop.xlane.xlu0 %913 }
 0x171   : > { %4485 = vst [vmem:[#allocation72_spill] sm:$0xff] %v3867_v41 }
 0x173   : > { %v3869_v14 = vpop.xlane.xlu1 %922 }
 0x174   : > { %4486 = vst [vmem:[#allocation73_spill] sm:$0xff] %v3869_v14  ;;  %v3871_v49 = vpop.xlane.xlu0 %919  ;;  %v3889_v14 = vand.u32 127, %v2013_v56 }
 0x175   : > { %4487 = vst [vmem:[#allocation74_spill] sm:$0xff] %v3871_v49 }
 0x176   : > { %vm2015_vm2 = vcmp.lt.s32.totalorder %v3889_v14, 16 }
 0x177   : > { %v3873_v54 = vpop.xlane.xlu1 %928 }
 0x178   : > { %4488 = vst [vmem:[#allocation75_spill] sm:$0xff] %v3873_v54  ;;  %v3875_v51 = vpop.xlane.xlu0 %925 }
 0x179   : > { %4489 = vst [vmem:[#allocation76_spill] sm:$0xff] %v3875_v51 }
 0x17b   : > { %v3877_v17 = vpop.xlane.xlu1 %934 }
 0x17c   : > { %4490 = vst [vmem:[#allocation77_spill] sm:$0xff] %v3877_v17  ;;  %v3879_v21 = vpop.xlane.xlu0 %931 }
 0x17d   : > { %4491 = vst [vmem:[#allocation78_spill] sm:$0xff] %v3879_v21 }
 0x17f   : > { %v3881_v48 = vpop.xlane.xlu1 %940 }
 0x180   : > { %4492 = vst [vmem:[#allocation79_spill] sm:$0xff] %v3881_v48  ;;  %v3883_v19 = vpop.xlane.xlu0 %937 }
 0x183   : > { %v3885_v10 = vpop.xlane.xlu1 %946 }
 0x184   : > { %4493 = vst [vmem:[#allocation80_spill] sm:$0xff] %v3885_v10  ;;  %v3887_v41 = vpop.xlane.xlu0 %943 }
 0x187   : > { %v953_v49 = vpop.xlane.xlu1 %952 }
 0x188   : > { %v950_v16 = vpop.xlane.xlu0 %949  ;;  %v1045_v54 = vsub.f32 %v3775_v18, %v953_v49 }
 0x189   : > { %v1044_v51 = vsub.f32 %v3777_v61, %v950_v16 }
 0x18a   : > { %v1077_v21 = vadd.f32 1e-06, %v1045_v54 }
 0x18b   : > { %v1076_v17 = vadd.f32 1e-06, %v1044_v51  ;;  %v959_v48 = vpop.xlane.xlu1 %958 }
 0x18c   : > { %v956_v15 = vpop.xlane.xlu0 %955  ;;  %2598 = vrcp.f32 %v1077_v21  ;;  %v3897_v10 = vsel %vm2015_vm2, %v3505_v31, %v1077_v21  ;;  %v1047_v49 = vsub.f32 %v3787_v39, %v959_v48 }
 0x18d   : > { %v3902_v56 = vsel %vm2015_vm2, %v3507_v30, %v1076_v17  ;;  %2600 = vrcp.f32 %v1076_v17  ;;  %v1046_v18 = vsub.f32 %v3789_v46, %v956_v15 }
 0x18e   : > { %v1079_v54 = vadd.f32 1e-06, %v1047_v49 }
 0x18f   : > { %v1078_v51 = vadd.f32 1e-06, %v1046_v18  ;;  %v965_v61 = vpop.xlane.xlu1 %964 }
 0x190   : > { %v962_v16 = vpop.xlane.xlu0 %961  ;;  %2602 = vrcp.f32 %v1079_v54  ;;  %v3909_v31 = vsel %vm2015_vm2, %v3519_v47, %v1079_v54  ;;  %v1049_v21 = vsub.f32 %v3801_v24, %v965_v61 }
 0x191   : > { %v1048_v30 = vsub.f32 %v3803_v29, %v962_v16  ;;  %2604 = vrcp.f32 %v1078_v51  ;;  %v3916_v17 = vsel %vm2015_vm2, %v3521_v50, %v1078_v51 }
 0x192   : > { %v1081_v15 = vadd.f32 1e-06, %v1049_v21  ;;  %v3934_v21 = vld [vmem:[%s4362_s2] ss:$0 sm:$0xff] }
 0x193   : > { %v1080_v39 = vadd.f32 1e-06, %v1048_v30  ;;  %v971_v46 = vpop.xlane.xlu1 %970 }
 0x194   : > { %v968_v48 = vpop.xlane.xlu0 %967  ;;  %v3921_v49 = vsel %vm2015_vm2, %v3533_v2, %v1081_v15  ;;  %v1051_v24 = vsub.f32 %v3811_v4, %v971_v46 }
 0x195   : > { %v3926_v47 = vsel %vm2015_vm2, %v3535_v20, %v1080_v39  ;;  %2606 = vrcp.f32 %v1080_v39  ;;  %v1050_v50 = vsub.f32 %v3813_v38, %v968_v48 }
 0x196   : > { %v2599_v29 = vpop.eup %2598  ;;  %v1083_v18 = vadd.f32 1e-06, %v1051_v24  ;;  %2608 = vrcp.f32 %v1081_v15 }
 0x197   : > { %v2601_v54 = vpop.eup %2600  ;;  %v1082_v51 = vadd.f32 1e-06, %v1050_v50  ;;  %v1815_v61 = vmul.f32 %v2599_v29, %v3678_v3  ;;  %v977_v16 = vpop.xlane.xlu1 %976 }
 0x198   : > { %v974_v2 = vpop.xlane.xlu0 %973  ;;  %2610 = vrcp.f32 %v1083_v18  ;;  %v3939_v20 = vsel %vm2015_vm2, %v3547_v13, %v1083_v18  ;;  %v1814_v38 = vmul.f32 %v2601_v54, %v3657_v45  ;;  %v1053_v4 = vsub.f32 %v3823_v28, %v977_v16 }
 0x199   : > { %2612 = vrcp.f32 %v1082_v51  ;;  %v3946_v3 = vsel %vm2015_vm2, %v3549_v32, %v1082_v51  ;;  %v1847_v30 = vadd.f32 %v1815_v61, %v3551_v27  ;;  %v1052_v15 = vsub.f32 %v3825_v44, %v974_v2 }
 0x19a   : > { %v2603_v39 = vpop.eup %2602  ;;  %v1846_v46 = vadd.f32 %v1814_v38, %v3560_v36  ;;  %v1085_v48 = vadd.f32 1e-06, %v1053_v4 }
 0x19b   : > { %v2605_v13 = vpop.eup %2604  ;;  %v1817_v45 = vmul.f32 %v2603_v39, %v3663_v55  ;;  %v1886_v28 = vadd.f32 %v3934_v21, %v1847_v30  ;;  %v1084_v24 = vadd.f32 1e-06, %v1052_v15  ;;  %v983_v50 = vpop.xlane.xlu1 %982 }
 0x19c   : > { %v980_v29 = vpop.xlane.xlu0 %979  ;;  %v1816_v32 = vmul.f32 %v2605_v13, %v3654_v22  ;;  %v1885_v18 = vadd.f32 %v3934_v21, %v1846_v46  ;;  %2614 = vrcp.f32 %v1085_v48  ;;  %v3958_v27 = vsel %vm2015_vm2, %v3565_v12, %v1085_v48 }
 0x19d   : > { %v1849_v36 = vadd.f32 %v1817_v45, %v3569_v59  ;;  %vm1918_vm4 = vcmp.ge.f32.partialorder %v1886_v28, 0.0  ;;  %v1950_v44 = vmul.f32 0.01, %v1886_v28  ;;  %2616 = vrcp.f32 %v1084_v24 }
 0x19e   : > { %v1848_v55 = vadd.f32 %v1816_v32, %v3577_v1  ;;  %vm1917_vm5 = vcmp.ge.f32.partialorder %v1885_v18, 0.0  ;;  %v1949_v54 = vmul.f32 0.01, %v1885_v18  ;;  %v3965_v22 = vsel %vm2015_vm2, %v3567_v57, %v1084_v24 }
 0x19f   : > { %v2607_v51 = vpop.eup %2606  ;;  %v1888_v61 = vadd.f32 %v3934_v21, %v1849_v36  ;;  %v1982_v16 = vsel %vm1918_vm4, %v1886_v28, %v1950_v44  ;;  %v1055_v12 = vsub.f32 %v3829_v23, %v983_v50  ;;  %v1054_v59 = vsub.f32 %v3831_v43, %v980_v29  ;;  %v989_v2 = vpop.xlane.xlu1 %988 }
 0x1a0   : > { %v986_v38 = vpop.xlane.xlu0 %985  ;;  %v1887_v1 = vadd.f32 %v3934_v21, %v1848_v55  ;;  %v1981_v4 = vsel %vm1917_vm5, %v1885_v18, %v1949_v54  ;;  %v2049_v30 = vmul.f32 %v3897_v10, %v1982_v16  ;;  %v1818_v15 = vmul.f32 %v2607_v51, %v3701_v26  ;;  %v2609_v57 = vpop.eup %2608 }
 0x1a1   : > { %v2048_v39 = vmul.f32 %v3902_v56, %v1981_v4  ;;  %vm1920_vm6 = vcmp.ge.f32.partialorder %v1888_v61, 0.0  ;;  %v1952_v46 = vmul.f32 0.01, %v1888_v61  ;;  %v1087_v48 = vadd.f32 1e-06, %v1055_v12 }
 0x1a2   : > { %v2611_v13 = vpop.eup %2610  ;;  %vm1919_vm7 = vcmp.ge.f32.partialorder %v1887_v1, 0.0  ;;  %v1951_v23 = vmul.f32 0.01, %v1887_v1  ;;  %2082 = vst.msk [vmem:[%s3975_s26 + $0x8] sm:$0xff] %vm2080_vm3, %v2049_v30  ;;  %v1086_v43 = vadd.f32 1e-06, %v1054_v59  ;;  %v1850_v10 = vadd.f32 %v1818_v15, %v3596_v60 }
 0x1a3   : > { %v2613_v45 = vpop.eup %2612  ;;  %2081 = vst.msk [vmem:[%s3975_s26] sm:$0xff] %vm2080_vm3, %v2048_v39  ;;  %v1984_v26 = vsel %vm1920_vm6, %v1888_v61, %v1952_v46  ;;  %2618 = vrcp.f32 %v1087_v48  ;;  %v3985_v56 = vsel %vm2015_vm2, %v3583_v6, %v1087_v48  ;;  %v1821_v28 = vmul.f32 %v2611_v13, %v3707_v42  ;;  %v995_v24 = vpop.xlane.xlu1 %994 }
 0x1a4   : > { %v992_v50 = vpop.xlane.xlu0 %991  ;;  %v1983_v29 = vsel %vm1919_vm7, %v1887_v1, %v1951_v23  ;;  %v2051_v32 = vmul.f32 %v3909_v31, %v1984_v26  ;;  %v1820_v60 = vmul.f32 %v2613_v45, %v3698_v5  ;;  %2620 = vrcp.f32 %v1086_v43 }
 0x1a5   : > { %v2050_v18 = vmul.f32 %v3916_v17, %v1983_v29  ;;  %v3994_v36 = vsel %vm2015_vm2, %v3585_v34, %v1086_v43  ;;  %v1889_v6 = vadd.f32 %v3934_v21, %v1850_v10  ;;  %v1853_v42 = vadd.f32 %v1821_v28, %v3605_v35  ;;  %v4495_v29 = vld [vmem:[#allocation67_spill] sm:$0xff] }
 0x1a6   : > { %v2615_v44 = vpop.eup %2614  ;;  %2084 = vst.msk [vmem:[%s3975_s26 + $0x18] sm:$0xff] %vm2080_vm3, %v2051_v32  ;;  %v1852_v55 = vadd.f32 %v1820_v60, %v3613_v33  ;;  %v1819_v31 = vmul.f32 %v2609_v57, %v3716_v0  ;;  %v1057_v5 = vsub.f32 %v3839_v63, %v989_v2  ;;  %v1056_v17 = vsub.f32 %v3841_v7, %v986_v38 }
 0x1a7   : > { %v2617_v54 = vpop.eup %2616  ;;  %2083 = vst.msk [vmem:[%s3975_s26 + $0x10] sm:$0xff] %vm2080_vm3, %v2050_v18  ;;  %vm1921_vm8 = vcmp.ge.f32.partialorder %v1889_v6, 0.0  ;;  %v1953_v34 = vmul.f32 0.01, %v1889_v6  ;;  %v1892_v51 = vadd.f32 %v3934_v21, %v1853_v42  ;;  %v1059_v35 = vsub.f32 %v3845_v53, %v995_v24  ;;  %v1001_v61 = vpop.xlane.xlu1 %1000  ;;  %v4494_v24 = vld [vmem:[#allocation66_spill] sm:$0xff] }
 0x1a8   : > { %v998_v16 = vpop.xlane.xlu0 %997  ;;  %v1891_v12 = vadd.f32 %v3934_v21, %v1852_v55  ;;  %v1851_v33 = vadd.f32 %v1819_v31, %v3587_v52  ;;  %v4010_v0 = vadd.f32 1e-06, %v1057_v5  ;;  %v4012_v63 = vadd.f32 1e-06, %v1056_v17  ;;  %v4499_v31 = vld [vmem:[#allocation70_spill] sm:$0xff] }
 0x1a9   : > { %v1985_v7 = vsel %vm1921_vm8, %v1889_v6, %v1953_v34  ;;  %vm1924_vm9 = vcmp.ge.f32.partialorder %v1892_v51, 0.0  ;;  %v1956_v59 = vmul.f32 0.01, %v1892_v51  ;;  %v1091_v2 = vadd.f32 1e-06, %v1059_v35 }
 0x1aa   : > { %vm1923_vm10 = vcmp.ge.f32.partialorder %v1891_v12, 0.0  ;;  %v1955_v38 = vmul.f32 0.01, %v1891_v12  ;;  %v2052_v1 = vmul.f32 %v3926_v47, %v1985_v7  ;;  %v1890_v53 = vadd.f32 %v3934_v21, %v1851_v33 }
 0x1ab   : > { %v1988_v4 = vsel %vm1924_vm9, %v1892_v51, %v1956_v59  ;;  %2622 = vrcp.f32 %v4010_v0  ;;  %v4017_v30 = vpop.xlane.xlu1 %1006  ;;  %v4027_v47 = vsel %vm2015_vm2, %v3619_v58, %v1091_v2  ;;  %v1058_v48 = vsub.f32 %v3847_v8, %v992_v50 }
 0x1ac   : > { %v1987_v52 = vsel %vm1923_vm10, %v1891_v12, %v1955_v38  ;;  %2085 = vst.msk [vmem:[%s3975_s26 + $0x20] sm:$0xff] %vm2080_vm3, %v2052_v1  ;;  %v2055_v15 = vmul.f32 %v3939_v20, %v1988_v4  ;;  %vm1922_vm11 = vcmp.ge.f32.partialorder %v1890_v53, 0.0  ;;  %v1954_v57 = vmul.f32 0.01, %v1890_v53  ;;  %v1004_v13 = vpop.xlane.xlu0 %1003 }
 0x1ad   : > { %v2619_v39 = vpop.eup %2618  ;;  %v2054_v46 = vmul.f32 %v3946_v3, %v1987_v52  ;;  %2624 = vrcp.f32 %v4012_v63  ;;  %v1822_v43 = vmul.f32 %v2617_v54, %v3733_v25  ;;  %v4038_v45 = vadd.f32 1e-06, %v1058_v48  ;;  %v4503_v48 = vld [vmem:[#allocation71_spill] sm:$0xff] }
 0x1ae   : > { %v2621_v23 = vpop.eup %2620  ;;  %2088 = vst.msk [vmem:[%s3975_s26 + $0x38] sm:$0xff] %vm2080_vm3, %v2055_v15  ;;  %v1986_v20 = vsel %vm1922_vm11, %v1890_v53, %v1954_v57  ;;  %2626 = vrcp.f32 %v1091_v2  ;;  %v1825_v3 = vmul.f32 %v2619_v39, %v3739_v37  ;;  %v1823_v8 = vmul.f32 %v2615_v44, %v3748_v11  ;;  %v4496_v37 = vld [vmem:[#allocation12_spill] sm:$0xff]  ;;  %v4498_v44 = vld [vmem:[#allocation69_spill] sm:$0xff] }
 0x1af   : > { %2087 = vst.msk [vmem:[%s3975_s26 + $0x30] sm:$0xff] %vm2080_vm3, %v2054_v46  ;;  %v2053_v10 = vmul.f32 %v3921_v49, %v1986_v20  ;;  %v1824_v58 = vmul.f32 %v2621_v23, %v3730_v9  ;;  %v1854_v26 = vadd.f32 %v1822_v43, %v3632_v62  ;;  %v1061_v50 = vsub.f32 %v4494_v24, %v1001_v61  ;;  %v4497_v49 = vld [vmem:[#allocation9_spill] sm:$0xff]  ;;  %v1013_v60 = vpop.xlane.xlu1 %1012  ;;  %v4504_v23 = vld [vmem:[#allocation72_spill] sm:$0xff] }
 0x1b0   : > { %v1857_v28 = vadd.f32 %v1825_v3, %v3641_v40  ;;  %v1060_v25 = vsub.f32 %v4495_v29, %v998_v16  ;;  %2628 = vrcp.f32 %v4038_v45  ;;  %v1855_v9 = vadd.f32 %v1823_v8, %v4497_v49  ;;  %v1010_v17 = vpop.xlane.xlu0 %1009  ;;  %v4505_v43 = vld [vmem:[#allocation73_spill] sm:$0xff]  ;;  %v4509_v29 = vld [vmem:[#allocation19_spill] sm:$0xff] }
 0x1b1   : > { %2086 = vst.msk [vmem:[%s3975_s26 + $0x28] sm:$0xff] %vm2080_vm3, %v2053_v10  ;;  %v1856_v32 = vadd.f32 %v1824_v58, %v4496_v37  ;;  %v1893_v18 = vadd.f32 %v3934_v21, %v1854_v26  ;;  %v4052_v62 = vadd.f32 1e-06, %v1061_v50  ;;  %v1063_v55 = vsub.f32 %v4498_v44, %v4017_v30  ;;  %v4506_v58 = vld [vmem:[#allocation6_spill] sm:$0xff]  ;;  %v4507_v26 = vld [vmem:[#allocation16_spill] sm:$0xff]  ;;  %v4508_v24 = vld [vmem:[#allocation37_spill] sm:$0xff] }
 0x1b2   : > { %v1896_v11 = vadd.f32 %v3934_v21, %v1857_v28  ;;  %v4054_v40 = vadd.f32 1e-06, %v1060_v25  ;;  %v1894_v42 = vadd.f32 %v3934_v21, %v1855_v9  ;;  %v1062_v5 = vsub.f32 %v4499_v31, %v1004_v13  ;;  %v4510_v37 = vld [vmem:[#allocation15_spill] sm:$0xff] }
 0x1b3   : > { %v1895_v6 = vadd.f32 %v3934_v21, %v1856_v32  ;;  %vm1925_vm12 = vcmp.ge.f32.partialorder %v1893_v18, 0.0  ;;  %v1957_v54 = vmul.f32 0.01, %v1893_v18  ;;  %2630 = vrcp.f32 %v4052_v62  ;;  %v1019_v1 = vpop.xlane.xlu1 %1018  ;;  %v4511_v49 = vld [vmem:[#allocation7_spill] sm:$0xff] }
 0x1b4   : > { %vm1928_vm13 = vcmp.ge.f32.partialorder %v1896_v11, 0.0  ;;  %v1960_v34 = vmul.f32 0.01, %v1896_v11  ;;  %vm1926_vm15 = vcmp.ge.f32.partialorder %v1894_v42, 0.0  ;;  %v1958_v61 = vmul.f32 0.01, %v1894_v42  ;;  %v1016_v46 = vpop.xlane.xlu0 %1015 }
 0x1b5   : > { %v2623_v51 = vpop.eup %2622  ;;  %vm1927_vm14 = vcmp.ge.f32.partialorder %v1895_v6, 0.0  ;;  %v1959_v35 = vmul.f32 0.01, %v1895_v6  ;;  %v1989_v16 = vsel %vm1925_vm12, %v1893_v18, %v1957_v54  ;;  %2632 = vrcp.f32 %v4054_v40 }
 0x1b6   : > { %v1992_v12 = vsel %vm1928_vm13, %v1896_v11, %v1960_v34  ;;  %v2056_v59 = vmul.f32 %v3965_v22, %v1989_v16  ;;  %v1990_v38 = vsel %vm1926_vm15, %v1894_v42, %v1958_v61  ;;  %v4071_v52 = vadd.f32 1e-06, %v1063_v55  ;;  %v4500_v22 = vld [vmem:[#allocation38_spill] sm:$0xff]  ;;  %v4512_v11 = vld [vmem:[#allocation20_spill] sm:$0xff] }
 0x1b7   : > { %v2625_v33 = vpop.eup %2624  ;;  %v1991_v7 = vsel %vm1927_vm14, %v1895_v6, %v1959_v35  ;;  %v2059_v2 = vmul.f32 %v3985_v56, %v1992_v12  ;;  %v2057_v30 = vmul.f32 %v3958_v27, %v1990_v38  ;;  %v4073_v15 = vadd.f32 1e-06, %v1062_v5  ;;  %v4501_v56 = vld [vmem:[#allocation41_spill] sm:$0xff]  ;;  %v4502_v27 = vld [vmem:[#allocation44_spill] sm:$0xff]  ;;  %v1025_v31 = vpop.xlane.xlu1 %1024 }
 0x1b8   : > { %v2627_v53 = vpop.eup %2626  ;;  %v2058_v4 = vmul.f32 %v3994_v36, %v1991_v7  ;;  %2089 = vst.msk [vmem:[%s3975_s26 + $0x40] sm:$0xff] %vm2080_vm3, %v2056_v59  ;;  %v1826_v57 = vmul.f32 %v2625_v33, %v4500_v22  ;;  %v1827_v36 = vmul.f32 %v2623_v51, %v4502_v27  ;;  %v1065_v13 = vsub.f32 %v4503_v48, %v1013_v60  ;;  %v1022_v54 = vpop.xlane.xlu0 %1021  ;;  %v4514_v61 = vld [vmem:[#allocation8_spill] sm:$0xff]  ;;  %v4518_v48 = vld [vmem:[#allocation75_spill] sm:$0xff] }
 0x1b9   : > { %2092 = vst.msk [vmem:[%s3975_s26 + $0x58] sm:$0xff] %vm2080_vm3, %v2059_v2  ;;  %v1829_v39 = vmul.f32 %v2627_v53, %v4501_v56  ;;  %2090 = vst.msk [vmem:[%s3975_s26 + $0x48] sm:$0xff] %vm2080_vm3, %v2057_v30  ;;  %v1064_v20 = vsub.f32 %v4504_v23, %v1010_v17  ;;  %v1067_v3 = vsub.f32 %v4505_v43, %v1019_v1  ;;  %2634 = vrcp.f32 %v4071_v52  ;;  %v4515_v1 = vld [vmem:[#allocation10_spill] sm:$0xff]  ;;  %v4516_v56 = vld [vmem:[#allocation48_spill] sm:$0xff] }
 0x1ba   : > { %2091 = vst.msk [vmem:[%s3975_s26 + $0x50] sm:$0xff] %vm2080_vm3, %v2058_v4  ;;  %v2629_v10 = vpop.eup %2628  ;;  %v2029_v8 = vsel %vm2015_vm2, %v4506_v58, %v4010_v0  ;;  %v1858_v28 = vadd.f32 %v1826_v57, %v4507_v26  ;;  %2636 = vrcp.f32 %v4073_v15  ;;  %v1859_v32 = vadd.f32 %v1827_v36, %v4510_v37  ;;  %v4519_v23 = vld [vmem:[#allocation76_spill] sm:$0xff] }
 0x1bb   : > { %v1828_v50 = vmul.f32 %v2629_v10, %v4508_v24  ;;  %v1861_v25 = vadd.f32 %v1829_v39, %v4509_v29  ;;  %v2028_v9 = vsel %vm2015_vm2, %v4511_v49, %v4012_v63  ;;  %v4100_v0 = vadd.f32 1e-06, %v1065_v13  ;;  %v4513_v63 = vld [vmem:[#allocation74_spill] sm:$0xff]  ;;  %v4520_v10 = vld [vmem:[#allocation11_spill] sm:$0xff] }
 0x1bc   : > { %v1897_v60 = vadd.f32 %v3934_v21, %v1858_v28  ;;  %v4102_v18 = vadd.f32 1e-06, %v1064_v20  ;;  %v1898_v44 = vadd.f32 %v3934_v21, %v1859_v32  ;;  %v4107_v55 = vadd.f32 1e-06, %v1067_v3  ;;  %v1028_v43 = vpop.xlane.xlu0 %1027  ;;  %v4522_v28 = vld [vmem:[#allocation49_spill] sm:$0xff] }
 0x1bd   : > { %v1860_v6 = vadd.f32 %v1828_v50, %v4512_v11  ;;  %v1900_v42 = vadd.f32 %v3934_v21, %v1861_v25  ;;  %2638 = vrcp.f32 %v4100_v0  ;;  %v1066_v17 = vsub.f32 %v4513_v63, %v1016_v46  ;;  %v2631_v34 = vpop.eup %2630  ;;  %v1031_v46 = vpop.xlane.xlu1 %1030  ;;  %v4523_v50 = vld [vmem:[#allocation47_spill] sm:$0xff] }
 0x1be   : > { %vm1929_vm0 = vcmp.ge.f32.partialorder %v1897_v60, 0.0  ;;  %v1961_v5 = vmul.f32 0.01, %v1897_v60  ;;  %vm1930_vm4 = vcmp.ge.f32.partialorder %v1898_v44, 0.0  ;;  %v2030_v16 = vsel %vm2015_vm2, %v4514_v61, %v4038_v45  ;;  %v4524_v25 = vld [vmem:[#allocation23_spill] sm:$0xff] }
 0x1bf   : > { %v1899_v51 = vadd.f32 %v3934_v21, %v1860_v6  ;;  %vm1932_vm1 = vcmp.ge.f32.partialorder %v1900_v42, 0.0  ;;  %v1964_v35 = vmul.f32 0.01, %v1900_v42  ;;  %v1962_v33 = vmul.f32 0.01, %v1898_v44  ;;  %v2633_v7 = vpop.eup %2632  ;;  %v4526_v11 = vld [vmem:[#allocation27_spill] sm:$0xff] }
 0x1c0   : > { %v1993_v12 = vsel %vm1929_vm0, %v1897_v60, %v1961_v5  ;;  %2640 = vrcp.f32 %v4102_v18  ;;  %v2033_v53 = vsel %vm2015_vm2, %v4515_v1, %v4052_v62  ;;  %v4125_v57 = vadd.f32 1e-06, %v1066_v17  ;;  %v4517_v62 = vld [vmem:[#allocation52_spill] sm:$0xff]  ;;  %v4528_v5 = vld [vmem:[#allocation14_spill] sm:$0xff] }
 0x1c1   : > { %vm1931_vm5 = vcmp.ge.f32.partialorder %v1899_v51, 0.0  ;;  %v1963_v59 = vmul.f32 0.01, %v1899_v51  ;;  %v2060_v2 = vmul.f32 %v2028_v9, %v1993_v12  ;;  %v1996_v38 = vsel %vm1932_vm1, %v1900_v42, %v1964_v35  ;;  %v4527_v42 = vld [vmem:[#allocation77_spill] sm:$0xff]  ;;  %v4529_v17 = vld [vmem:[#allocation28_spill] sm:$0xff] }
 0x1c2   : > { %v2063_v4 = vmul.f32 %v4027_v47, %v1996_v38  ;;  %v1994_v30 = vsel %vm1930_vm4, %v1898_v44, %v1962_v33  ;;  %2642 = vrcp.f32 %v4107_v55  ;;  %v1830_v39 = vmul.f32 %v2633_v7, %v4516_v56 }
 0x1c3   : > { %v1995_v45 = vsel %vm1931_vm5, %v1899_v51, %v1963_v59  ;;  %2093 = vst.msk [vmem:[%s3975_s26 + $0x60] sm:$0xff] %vm2080_vm3, %v2060_v2  ;;  %v2061_v22 = vmul.f32 %v2029_v8, %v1994_v30  ;;  %v2635_v27 = vpop.eup %2634  ;;  %v1831_v47 = vmul.f32 %v2631_v34, %v4517_v62  ;;  %v1069_v13 = vsub.f32 %v4518_v48, %v1025_v31  ;;  %v4521_v8 = vld [vmem:[#allocation24_spill] sm:$0xff]  ;;  %v4530_v51 = vld [vmem:[#allocation78_spill] sm:$0xff] }
 0x1c4   : > { %v2062_v36 = vmul.f32 %v2030_v16, %v1995_v45  ;;  %2096 = vst.msk [vmem:[%s3975_s26 + $0x78] sm:$0xff] %vm2080_vm3, %v2063_v4  ;;  %v1068_v20 = vsub.f32 %v4519_v23, %v1022_v54  ;;  %v2637_v3 = vpop.eup %2636  ;;  %v2032_v58 = vsel %vm2015_vm2, %v4520_v10, %v4054_v40  ;;  %2644 = vrcp.f32 %v4125_v57  ;;  %v4525_v40 = vld [vmem:[#allocation13_spill] sm:$0xff]  ;;  %v1037_v16 = vpop.xlane.xlu1 %1036 }
 0x1c5   : > { %2094 = vst.msk [vmem:[%s3975_s26 + $0x68] sm:$0xff] %vm2080_vm3, %v2061_v22  ;;  %v1862_v26 = vadd.f32 %v1830_v39, %v4521_v8  ;;  %v1833_v24 = vmul.f32 %v2635_v27, %v4522_v28  ;;  %v1832_v29 = vmul.f32 %v2637_v3, %v4523_v50  ;;  %v1863_v37 = vadd.f32 %v1831_v47, %v4524_v25  ;;  %v4531_v22 = vld [vmem:[#allocation17_spill] sm:$0xff]  ;;  %v4532_v47 = vld [vmem:[#allocation56_spill] sm:$0xff]  ;;  %v4536_v8 = vld [vmem:[#allocation18_spill] sm:$0xff] }
 0x1c6   : > { %2095 = vst.msk [vmem:[%s3975_s26 + $0x70] sm:$0xff] %vm2080_vm3, %v2062_v36  ;;  %v4146_v32 = vadd.f32 1e-06, %v1069_v13  ;;  %v4148_v49 = vadd.f32 1e-06, %v1068_v20  ;;  %v2035_v9 = vsel %vm2015_vm2, %v4525_v40, %v4071_v52  ;;  %v1071_v44 = vsub.f32 %v4527_v42, %v1031_v46  ;;  %v4533_v20 = vld [vmem:[#allocation57_spill] sm:$0xff] }
 0x1c7   : > { %v1901_v60 = vadd.f32 %v3934_v21, %v1862_v26  ;;  %v1865_v6 = vadd.f32 %v1833_v24, %v4526_v11  ;;  %v2639_v31 = vpop.eup %2638  ;;  %v2034_v63 = vsel %vm2015_vm2, %v4528_v5, %v4073_v15  ;;  %v1864_v54 = vadd.f32 %v1832_v29, %v4529_v17  ;;  %v1034_v15 = vpop.xlane.xlu0 %1033  ;;  %v4537_v28 = vld [vmem:[#allocation55_spill] sm:$0xff]  ;;  %v4538_v50 = vld [vmem:[#allocation32_spill] sm:$0xff] }
 0x1c8   : > { %v1902_v34 = vadd.f32 %v3934_v21, %v1863_v37  ;;  %v1070_v35 = vsub.f32 %v4530_v51, %v1028_v43  ;;  %2646 = vrcp.f32 %v4146_v32  ;;  %v4168_v38 = vadd.f32 1e-06, %v1071_v44  ;;  %v4534_v43 = vld [vmem:[#allocation58_spill] sm:$0xff]  ;;  %v4539_v37 = vld [vmem:[#allocation35_spill] sm:$0xff]  ;;  %v4542_v44 = vld [vmem:[#allocation36_spill] sm:$0xff] }
 0x1c9   : > { %vm1933_vm6 = vcmp.ge.f32.partialorder %v1901_v60, 0.0  ;;  %v1965_v52 = vmul.f32 0.01, %v1901_v60  ;;  %v1904_v61 = vadd.f32 %v3934_v21, %v1865_v6  ;;  %v1903_v33 = vadd.f32 %v3934_v21, %v1864_v54 }
 0x1ca   : > { %v2641_v12 = vpop.eup %2640  ;;  %vm1934_vm7 = vcmp.ge.f32.partialorder %v1902_v34, 0.0  ;;  %v1966_v7 = vmul.f32 0.01, %v1902_v34  ;;  %2648 = vrcp.f32 %v4148_v49  ;;  %v2037_v56 = vsel %vm2015_vm2, %v4531_v22, %v4100_v0 }
 0x1cb   : > { %v1997_v59 = vsel %vm1933_vm6, %v1901_v60, %v1965_v52  ;;  %vm1936_vm8 = vcmp.ge.f32.partialorder %v1904_v61, 0.0  ;;  %v1968_v2 = vmul.f32 0.01, %v1904_v61  ;;  %vm1935_vm9 = vcmp.ge.f32.partialorder %v1903_v33, 0.0  ;;  %v1040_v25 = vpop.xlane.xlu0 %1039 }
 0x1cc   : > { %v2643_v1 = vpop.eup %2642  ;;  %v1967_v4 = vmul.f32 0.01, %v1903_v33  ;;  %v2064_v30 = vmul.f32 %v2032_v58, %v1997_v59  ;;  %v1998_v45 = vsel %vm1934_vm7, %v1902_v34, %v1966_v7  ;;  %2650 = vrcp.f32 %v4168_v38  ;;  %v1043_v58 = vpop.xlane.xlu1 %1042 }
 0x1cd   : > { %v2000_v39 = vsel %vm1936_vm8, %v1904_v61, %v1968_v2  ;;  %v2065_v46 = vmul.f32 %v2033_v53, %v1998_v45  ;;  %v4177_v62 = vadd.f32 1e-06, %v1070_v35  ;;  %v1834_v48 = vmul.f32 %v2641_v12, %v4532_v47  ;;  %v4535_v53 = vld [vmem:[#allocation79_spill] sm:$0xff] }
 0x1ce   : > { %v1999_v27 = vsel %vm1935_vm9, %v1903_v33, %v1967_v4  ;;  %2097 = vst.msk [vmem:[%s3975_s26 + $0x80] sm:$0xff] %vm2080_vm3, %v2064_v30  ;;  %v2067_v36 = vmul.f32 %v2035_v9, %v2000_v39  ;;  %v2645_v13 = vpop.eup %2644  ;;  %v1837_v0 = vmul.f32 %v2643_v1, %v4533_v20  ;;  %v1835_v3 = vmul.f32 %v2639_v31, %v4534_v43  ;;  %v4540_v9 = vld [vmem:[#allocation31_spill] sm:$0xff] }
 0x1cf   : > { %v2066_v23 = vmul.f32 %v2034_v63, %v1999_v27  ;;  %2098 = vst.msk [vmem:[%s3975_s26 + $0x88] sm:$0xff] %vm2080_vm3, %v2065_v46  ;;  %v1073_v10 = vsub.f32 %v4535_v53, %v1037_v16  ;;  %v2036_v26 = vsel %vm2015_vm2, %v4536_v8, %v4102_v18  ;;  %v1836_v24 = vmul.f32 %v2645_v13, %v4537_v28  ;;  %v4541_v18 = vld [vmem:[#allocation21_spill] sm:$0xff]  ;;  %v4543_v63 = vld [vmem:[#allocation80_spill] sm:$0xff]  ;;  %v4548_v20 = vld [vmem:[#allocation59_spill] sm:$0xff] }
 0x1d0   : > { %2100 = vst.msk [vmem:[%s3975_s26 + $0x98] sm:$0xff] %vm2080_vm3, %v2067_v36  ;;  %2652 = vrcp.f32 %v4177_v62  ;;  %v1866_v29 = vadd.f32 %v1834_v48, %v4538_v50  ;;  %v1869_v40 = vadd.f32 %v1837_v0, %v4539_v37  ;;  %v1867_v60 = vadd.f32 %v1835_v3, %v4540_v9  ;;  %v4545_v36 = vld [vmem:[#allocation60_spill] sm:$0xff]  ;;  %v4546_v48 = vld [vmem:[#allocation61_spill] sm:$0xff]  ;;  %v4549_v43 = vld [vmem:[#allocation43_spill] sm:$0xff] }
 0x1d1   : > { %2099 = vst.msk [vmem:[%s3975_s26 + $0x90] sm:$0xff] %vm2080_vm3, %v2066_v23  ;;  %v4198_v11 = vadd.f32 1e-06, %v1073_v10  ;;  %v1072_v6 = vsub.f32 %v3883_v19, %v1034_v15  ;;  %v2039_v42 = vsel %vm2015_vm2, %v4541_v18, %v4107_v55  ;;  %v1868_v31 = vadd.f32 %v1836_v24, %v4542_v44  ;;  %v4550_v53 = vld [vmem:[#allocation45_spill] sm:$0xff]  ;;  %v4553_v50 = vld [vmem:[#allocation26_spill] sm:$0xff] }
 0x1d2   : > { %v1905_v5 = vadd.f32 %v3934_v21, %v1866_v29  ;;  %v1075_v17 = vsub.f32 %v4543_v63, %v1043_v58  ;;  %v2647_v54 = vpop.eup %2646  ;;  %v1908_v34 = vadd.f32 %v3934_v21, %v1869_v40  ;;  %v1906_v51 = vadd.f32 %v3934_v21, %v1867_v60  ;;  %v4551_v58 = vld [vmem:[#allocation42_spill] sm:$0xff]  ;;  %v4552_v28 = vld [vmem:[#allocation25_spill] sm:$0xff] }
 0x1d3   : > { %2654 = vrcp.f32 %v4198_v11  ;;  %v1074_v19 = vsub.f32 %v3887_v41, %v1040_v25  ;;  %v1907_v52 = vadd.f32 %v3934_v21, %v1868_v31  ;;  %v4213_v61 = vadd.f32 1e-06, %v1072_v6  ;;  %v4544_v41 = vld [vmem:[#allocation22_spill] sm:$0xff]  ;;  %v4555_v9 = vld [vmem:[#allocation29_spill] sm:$0xff] }
 0x1d4   : > { %v2649_v35 = vpop.eup %2648  ;;  %vm1937_vm10 = vcmp.ge.f32.partialorder %v1905_v5, 0.0  ;;  %v1969_v55 = vmul.f32 0.01, %v1905_v5  ;;  %vm1940_vm11 = vcmp.ge.f32.partialorder %v1908_v34, 0.0  ;;  %v1972_v16 = vmul.f32 0.01, %v1908_v34 }
 0x1d5   : > { %vm1938_vm12 = vcmp.ge.f32.partialorder %v1906_v51, 0.0  ;;  %v1970_v12 = vmul.f32 0.01, %v1906_v51  ;;  %vm1939_vm13 = vcmp.ge.f32.partialorder %v1907_v52, 0.0  ;;  %v1971_v33 = vmul.f32 0.01, %v1907_v52 }
 0x1d6   : > { %v2001_v7 = vsel %vm1937_vm10, %v1905_v5, %v1969_v55  ;;  %2656 = vrcp.f32 %v4213_v61  ;;  %v2651_v15 = vpop.eup %2650  ;;  %v2038_v59 = vsel %vm2015_vm2, %v4544_v41, %v4125_v57  ;;  %v2004_v1 = vsel %vm1940_vm11, %v1908_v34, %v1972_v16  ;;  %v4547_v57 = vld [vmem:[#allocation62_spill] sm:$0xff] }
 0x1d7   : > { %v2068_v2 = vmul.f32 %v2036_v26, %v2001_v7  ;;  %v2002_v4 = vsel %vm1938_vm12, %v1906_v51, %v1970_v12  ;;  %v2003_v30 = vsel %vm1939_vm13, %v1907_v52, %v1971_v33  ;;  %v2071_v45 = vmul.f32 %v2039_v42, %v2004_v1  ;;  %v4554_v25 = vld [vmem:[#allocation46_spill] sm:$0xff]  ;;  %v4556_v42 = vld [vmem:[#allocation68_spill] sm:$0xff] }
 0x1d8   : > { %v2069_v22 = vmul.f32 %v2037_v56, %v2002_v4  ;;  %v4220_v39 = vadd.f32 1e-06, %v1075_v17  ;;  %v2070_v46 = vmul.f32 %v2038_v59, %v2003_v30  ;;  %v4224_v27 = vadd.f32 1e-06, %v1074_v19  ;;  %v4557_v44 = vld [vmem:[#allocation30_spill] sm:$0xff]  ;;  %v4558_v51 = vld [vmem:[#allocation64_spill] sm:$0xff] }
 0x1d9   : > { %2101 = vst.msk [vmem:[%s3975_s26 + $0xa0] sm:$0xff] %vm2080_vm3, %v2068_v2  ;;  %v1838_v47 = vmul.f32 %v2649_v35, %v4545_v36  ;;  %v1841_v13 = vmul.f32 %v2651_v15, %v4546_v48  ;;  %2104 = vst.msk [vmem:[%s3975_s26 + $0xb8] sm:$0xff] %vm2080_vm3, %v2071_v45  ;;  %v1839_v56 = vmul.f32 %v2647_v54, %v4547_v57  ;;  %v4559_v55 = vld [vmem:[#allocation50_spill] sm:$0xff]  ;;  %v4560_v15 = vld [vmem:[#allocation51_spill] sm:$0xff] }
 0x1da   : > { %v2653_v23 = vpop.eup %2652  ;;  %2102 = vst.msk [vmem:[%s3975_s26 + $0xa8] sm:$0xff] %vm2080_vm3, %v2069_v22  ;;  %2658 = vrcp.f32 %v4220_v39  ;;  %2103 = vst.msk [vmem:[%s3975_s26 + $0xb0] sm:$0xff] %vm2080_vm3, %v2070_v46  ;;  %v2041_v24 = vsel %vm2015_vm2, %v4552_v28, %v4146_v32  ;;  %v2040_v29 = vsel %vm2015_vm2, %v4553_v50, %v4148_v49  ;;  %v2043_v60 = vsel %vm2015_vm2, %v4555_v9, %v4168_v38  ;;  %v4561_v45 = vld [vmem:[#allocation65_spill] sm:$0xff]  ;;  %v4562_v46 = vld [vmem:[#allocation63_spill] sm:$0xff] }
 0x1db   : > { %v1840_v0 = vmul.f32 %v2653_v23, %v4548_v20  ;;  %2660 = vrcp.f32 %v4224_v27  ;;  %v1870_v3 = vadd.f32 %v1838_v47, %v4549_v43  ;;  %v1873_v10 = vadd.f32 %v1841_v13, %v4550_v53  ;;  %v4563_v13 = vld [vmem:[#allocation53_spill] sm:$0xff]  ;;  %v4565_v20 = vld [vmem:[#allocation54_spill] sm:$0xff] }
 0x1dc   : > { %v1871_v8 = vadd.f32 %v1839_v56, %v4551_v58  ;;  %v2042_v49 = vsel %vm2015_vm2, %v4557_v44, %v4177_v62  ;;  %v4564_v57 = vld [vmem:[#allocation33_spill] sm:$0xff] }
 0x1dd   : > { %v2655_v26 = vpop.eup %2654  ;;  %v1872_v37 = vadd.f32 %v1840_v0, %v4554_v25  ;;  %v1909_v40 = vadd.f32 %v3934_v21, %v1870_v3  ;;  %v1912_v6 = vadd.f32 %v3934_v21, %v1873_v10  ;;  %v2045_v56 = vsel %vm2015_vm2, %v4564_v57, %v4198_v11  ;;  %v4566_v3 = vld [vmem:[#allocation34_spill] sm:$0xff] }
 0x1de   : > { %v1910_v18 = vadd.f32 %v3934_v21, %v1871_v8  ;;  %v1843_v32 = vmul.f32 %v2655_v26, %v4556_v42  ;;  %v2044_v53 = vsel %vm2015_vm2, %v4566_v3, %v4213_v61  ;;  %v4567_v61 = vld [vmem:[#allocation39_spill] sm:$0xff] }
 0x1df   : > { %v1911_v31 = vadd.f32 %v3934_v21, %v1872_v37  ;;  %vm1941_vm14 = vcmp.ge.f32.partialorder %v1909_v40, 0.0  ;;  %v1973_v5 = vmul.f32 0.01, %v1909_v40  ;;  %vm1944_vm15 = vcmp.ge.f32.partialorder %v1912_v6, 0.0 }
 0x1e0   : > { %v2657_v63 = vpop.eup %2656  ;;  %v1976_v17 = vmul.f32 0.01, %v1912_v6  ;;  %vm1942_vm0 = vcmp.ge.f32.partialorder %v1910_v18, 0.0  ;;  %v1974_v38 = vmul.f32 0.01, %v1910_v18  ;;  %v1875_v16 = vadd.f32 %v1843_v32, %v4559_v55 }
 0x1e1   : > { %vm1943_vm1 = vcmp.ge.f32.partialorder %v1911_v31, 0.0  ;;  %v1975_v54 = vmul.f32 0.01, %v1911_v31  ;;  %v2005_v34 = vsel %vm1941_vm14, %v1909_v40, %v1973_v5  ;;  %v1842_v19 = vmul.f32 %v2657_v63, %v4558_v51 }
 0x1e2   : > { %v2072_v35 = vmul.f32 %v2040_v29, %v2005_v34  ;;  %v2008_v52 = vsel %vm1944_vm15, %v1912_v6, %v1976_v17  ;;  %v2006_v62 = vsel %vm1942_vm0, %v1910_v18, %v1974_v38  ;;  %v1914_v1 = vadd.f32 %v3934_v21, %v1875_v16  ;;  %v4568_v29 = vld [vmem:[#allocation40_spill] sm:$0xff] }
 0x1e3   : > { %v2007_v12 = vsel %vm1943_vm1, %v1911_v31, %v1975_v54  ;;  %v2075_v33 = vmul.f32 %v2043_v60, %v2008_v52  ;;  %v2073_v7 = vmul.f32 %v2041_v24, %v2006_v62  ;;  %v1874_v41 = vadd.f32 %v1842_v19, %v4560_v15 }
 0x1e4   : > { %v2659_v59 = vpop.eup %2658  ;;  %v2074_v2 = vmul.f32 %v2042_v49, %v2007_v12  ;;  %2105 = vst.msk [vmem:[%s3975_s26 + $0xc0] sm:$0xff] %vm2080_vm3, %v2072_v35  ;;  %vm1946_vm4 = vcmp.ge.f32.partialorder %v1914_v1, 0.0  ;;  %v1978_v47 = vmul.f32 0.01, %v1914_v1  ;;  %v2046_v25 = vsel %vm2015_vm2, %v4568_v29, %v4224_v27 }
 0x1e5   : > { %v2661_v4 = vpop.eup %2660  ;;  %2108 = vst.msk [vmem:[%s3975_s26 + $0xd8] sm:$0xff] %vm2080_vm3, %v2075_v33  ;;  %2106 = vst.msk [vmem:[%s3975_s26 + $0xc8] sm:$0xff] %vm2080_vm3, %v2073_v7  ;;  %v1913_v30 = vadd.f32 %v3934_v21, %v1874_v41  ;;  %v1845_v22 = vmul.f32 %v2659_v59, %v4561_v45 }
 0x1e6   : > { %2107 = vst.msk [vmem:[%s3975_s26 + $0xd0] sm:$0xff] %vm2080_vm3, %v2074_v2  ;;  %v1844_v36 = vmul.f32 %v2661_v4, %v4562_v46  ;;  %v2010_v43 = vsel %vm1946_vm4, %v1914_v1, %v1978_v47 }
 0x1e7   : > { %vm1945_vm5 = vcmp.ge.f32.partialorder %v1913_v30, 0.0  ;;  %v1977_v48 = vmul.f32 0.01, %v1913_v30  ;;  %v1877_v23 = vadd.f32 %v1845_v22, %v4563_v13  ;;  %v2077_v8 = vmul.f32 %v2045_v56, %v2010_v43 }
 0x1e8   : > { %v1876_v0 = vadd.f32 %v1844_v36, %v4565_v20 }
 0x1e9   : > { %v2009_v10 = vsel %vm1945_vm5, %v1913_v30, %v1977_v48  ;;  %v1916_v58 = vadd.f32 %v3934_v21, %v1877_v23  ;;  %2110 = vst.msk [vmem:[%s3975_s26 + $0xe8] sm:$0xff] %vm2080_vm3, %v2077_v8 }
 0x1ea   : > { %v1915_v26 = vadd.f32 %v3934_v21, %v1876_v0  ;;  %v2076_v28 = vmul.f32 %v2044_v53, %v2009_v10  ;;  %v2047_v21 = vsel %vm2015_vm2, %v4567_v61, %v4220_v39 }
 0x1eb   : > { %vm1948_vm6 = vcmp.ge.f32.partialorder %v1916_v58, 0.0  ;;  %v1980_v24 = vmul.f32 0.01, %v1916_v58 }
 0x1ec   : > { %vm1947_vm7 = vcmp.ge.f32.partialorder %v1915_v26, 0.0  ;;  %v1979_v11 = vmul.f32 0.01, %v1915_v26  ;;  %2109 = vst.msk [vmem:[%s3975_s26 + $0xe0] sm:$0xff] %vm2080_vm3, %v2076_v28 }
 0x1ed   : > { %v2012_v50 = vsel %vm1948_vm6, %v1916_v58, %v1980_v24 }
 0x1ee   : > { %v2011_v37 = vsel %vm1947_vm7, %v1915_v26, %v1979_v11  ;;  %v2079_v40 = vmul.f32 %v2047_v21, %v2012_v50 }
 0x1ef   : > { %v2078_v9 = vmul.f32 %v2046_v25, %v2011_v37 }
 0x1f0   : > { %2112 = vst.msk [vmem:[%s3975_s26 + $0xf8] sm:$0xff] %vm2080_vm3, %v2079_v40 }
 0x1f1   : > { %2111 = vst.msk [vmem:[%s3975_s26 + $0xf0] sm:$0xff] %vm2080_vm3, %v2078_v9 }
 0x1f2   : > { %2675 = shalt.err (!%p2672_p5)
}
 0x1f3   : > { %s2676_s6 = scalar_lea.hbm %s4308_s30, 4096  ;;  %s2680_s17 = scalar_lea.hbm %s4363_s3, 8192 }
 0x1f4   : > { %p2677_p7 = scmp.ne.s32.totalorder %s4308_s30, %s2676_s6  ;;  %p2681_p12 = scmp.lt.u32.totalorder %s4308_s30, %s4363_s3 }
 0x1f5   : > { %p2682_p13 = scmp.lt.u32.totalorder %s2680_s17, %s2676_s6  ;;  %p2684_p1 = scmp.lt.u32.totalorder %s2676_s6, %s4308_s30 }
 0x1f6   : > { %p2678_p10 = pnand %p2677_p7, %p2787_p6 }
 0x1f7   : > { %p2683_p0 = por %p2682_p13, %p2681_p12 }
 0x1f8   : > { %p2679_p11 = pneg %p2678_p10 }
 0x1f9   : > { %p2685_p2 = por %p2684_p1, %p2683_p0 }
 0x1fb   : > { %p2686_p3 = pnand %p2685_p2, %p2679_p11 }
 0x1fd   : > { %2689 = shalt.err (!%p2686_p3)
}
 0x1fe   : > { %s2727_s24 = smov 128   ;;  %s2728_s25 = smov 8  }
 0x1ff   : > { %2425 = dma.vmem_to_hbm [thread:$0]  (%p2787_p6), %s4310_s28, 4096, %s4308_s30, %s4318_s4, %s2727_s24, %s2727_s24, %s2728_s25  }
 0x200 PF: > { %s2142_s26 = sand.u32 1, %s2712_s12   ;;  %p2428_p4 = pnand %p2197_p9, %p2791_p8 }
 0x201   : > { %s2143_s27 = scalar_lea.sflag [#allocation4], %s2142_s26 }
 0x202   : > { %2707 = dma.done.wait (!%p2428_p4), %s2143_s27, 4096  }
 0x203   : > { %2709 = vsyncadd (!%p2428_p4), %s2143_s27, 4294963200  ;;  %p13_p5 = scmp.ge.s32.totalorder %s2772_s18, 4   ;;  %s4569_s12 = smov %s2716_s13 }
 0x204   : > { %s4570_s13 = smov %s2720_s14  ;;  %s4571_s14 = smov %s2785_s21 }
 0x205   : > { %s4572_s15 = smov %s2772_s18  ;;  %15 = sbr.rel (!%p13_p5) target bundleno = 3 (0x3), region = 115 }
 0x20c   :  { %2148 = vsyncpa [#allocation4], 1 }
 0x20d   :  { %2150 = vsyncpa [#allocation4 + $0x1], 1 }

</bundles_post_ra>
